<compile_context>
chip_gen: v5e
topology: v5e:2x2
jax: 0.10.0
libtpu: 0.0.40
codegen_flags: <defaults>
</compile_context>

<pallas_src>
import functools

import jax
import jax.numpy as jnp
from jax.experimental import pallas as pl
from jax.experimental.pallas import tpu as pltpu

BN_EPS = 1e-5
VMEM_LIMIT_BYTES = 32 * 1024 * 1024      # safe on v5e/v6e (128 MiB) and v7x (64 MiB)


# ------------------------------ Pallas kernel -------------------------------

def _phi_block_kernel(x_ref, w1_ref, w2_ref, wskip_ref, bnp_ref, mask_ref,
                      o_ref, *, n, l3, hwp, head, offsets, inv_count):
    """Entire PhiNetBlock forward for the whole batch in one grid step.

    x_ref    : (N, Cinp, L3)  zero-padded, channel-padded, flattened images
    w1_ref   : (Cout, k*k*Cinp)   conv1 taps folded along K
    w2_ref   : (Cout, k*k*Cout)   conv2 taps folded along K
    wskip_ref: (Cout, Cinp)       1x1 skip conv (or identity)
    bnp_ref  : (Cout, 5)          [gamma1, beta1, gamma2, beta2, skip_bias]
    mask_ref : (1, N*HWp)         1.0 on valid columns, 0.0 on wrap columns
    o_ref    : (N, Cout, HWp)
    """
    mask = mask_ref[...]                                     # (1, N*HWp)

    # ---- shifted-stack RHS for conv1 (+ centre tap, reused by the skip path)
    centre_idx = len(offsets) // 2
    stacks1, centres = [], []
    for i in range(n):
        xi = x_ref[i]                                        # (Cinp, L3)
        taps = [xi[:, off:off + hwp] for off in offsets]     # k*k x (Cinp, HWp)
        stacks1.append(jnp.concatenate(taps, axis=0))        # (k*k*Cinp, HWp)
        centres.append(taps[centre_idx])                     # x at valid positions
    rhs1 = jnp.concatenate(stacks1, axis=1)                  # (k*k*Cinp, N*HWp)
    x_centre = jnp.concatenate(centres, axis=1)              # (Cinp,     N*HWp)

    # ---- conv1: one K = k*k*Cinp MXU matmul for the whole batch
    z1 = jnp.dot(w1_ref[...], rhs1,
                 preferred_element_type=jnp.float32) * mask  # (Cout, N*HWp)

    # ---- BN1 (training-mode batch statistics; conv bias cancels under BN)
    mean1 = jnp.sum(z1, axis=1, keepdims=True) * inv_count
    c1 = (z1 - mean1) * mask
    var1 = jnp.sum(c1 * c1, axis=1, keepdims=True) * inv_count
    scale1 = bnp_ref[:, 0:1] * jax.lax.rsqrt(var1 + BN_EPS)
    shift1 = bnp_ref[:, 1:2] - mean1 * scale1
    h1 = jnp.maximum(z1 * scale1 + shift1, 0.0) * mask       # wrap cols -> 0

    # ---- re-pad h1 (VMEM only) and build the conv2 shifted stack
    cmid = h1.shape[0]
    tail = l3 - head - hwp
    zhead = jnp.zeros((cmid, head), jnp.float32)
    ztail = jnp.zeros((cmid, tail), jnp.float32)
    stacks2 = []
    for i in range(n):
        hp = jnp.concatenate([zhead, h1[:, i * hwp:(i + 1) * hwp], ztail],
                             axis=1)                          # (Cout, L3)
        stacks2.append(jnp.concatenate(
            [hp[:, off:off + hwp] for off in offsets], axis=0))
    rhs2 = jnp.concatenate(stacks2, axis=1)                   # (k*k*Cout, N*HWp)

    # ---- conv2: one K = k*k*Cout MXU matmul
    z2 = jnp.dot(w2_ref[...], rhs2,
                 preferred_element_type=jnp.float32) * mask   # (Cout, N*HWp)

    # ---- BN2
    mean2 = jnp.sum(z2, axis=1, keepdims=True) * inv_count
    c2 = (z2 - mean2) * mask
    var2 = jnp.sum(c2 * c2, axis=1, keepdims=True) * inv_count
    scale2 = bnp_ref[:, 2:3] * jax.lax.rsqrt(var2 + BN_EPS)
    shift2 = bnp_ref[:, 3:4] - mean2 * scale2 + bnp_ref[:, 4:5]   # + skip bias

    # ---- skip (1x1 conv / identity) + residual + ReLU
    skip = jnp.dot(wskip_ref[...], x_centre, preferred_element_type=jnp.float32)
    y = jnp.maximum(z2 * scale2 + shift2 + skip, 0.0)

    for i in range(n):                                         # lane-aligned stores
        o_ref[i] = y[:, i * hwp:(i + 1) * hwp].astype(o_ref.dtype)


# ----------------------------- pallas_call wrapper ---------------------------

def phi_block_fused(xpad, w1cat, w2cat, wskip, bnp, mask, *, n, cout, l3, hwp,
                    head, offsets, inv_count):
    kern = functools.partial(_phi_block_kernel, n=n, l3=l3, hwp=hwp, head=head,
                             offsets=offsets, inv_count=inv_count)
    return pl.pallas_call(
        kern,
        out_shape=jax.ShapeDtypeStruct((n, cout, hwp), jnp.float32),
        grid_spec=pltpu.PrefetchScalarGridSpec(
            num_scalar_prefetch=0,
            grid=(1,),
            in_specs=[pl.BlockSpec(xpad.shape, lambda i: (0, 0, 0)),
                      pl.BlockSpec(w1cat.shape, lambda i: (0, 0)),
                      pl.BlockSpec(w2cat.shape, lambda i: (0, 0)),
                      pl.BlockSpec(wskip.shape, lambda i: (0, 0)),
                      pl.BlockSpec(bnp.shape, lambda i: (0, 0)),
                      pl.BlockSpec(mask.shape, lambda i: (0, 0))],
            out_specs=pl.BlockSpec((n, cout, hwp), lambda i: (0, 0, 0))),
        compiler_params=pltpu.CompilerParams(
            dimension_semantics=("arbitrary",),
            vmem_limit_bytes=VMEM_LIMIT_BYTES),
    )(xpad, w1cat, w2cat, wskip, bnp, mask)


# --------------------------------- JAX glue ----------------------------------

def _round_up(v, m):
    return ((v + m - 1) // m) * m


def _choose_wp(h, w, pad):
    """Smallest padded row stride >= W+2*pad making H*Wp a lane multiple (best effort)."""
    base = w + 2 * pad
    for wp in range(base, 2 * base + 1):
        if (h * wp) % 128 == 0:
            return wp
    return base


def snap_to_fibonacci(c):
    fib = [1, 2, 3, 5, 8, 13, 21, 34, 55, 89, 144, 233]
    return min(fib, key=lambda v: abs(v - c))


def init_params(key, in_channels, out_channels, kernel_size=3,
                phi_optimization=True):
    """Deterministic synthetic parameters mirroring PhiNetBlock.__init__."""
    if phi_optimization:
        out_channels = snap_to_fibonacci(out_channels)
    ks = jax.random.split(key, 10)

    def conv_init(kw_, kb_, cin, cout, ksz):
        fan_in = cin * ksz * ksz
        bound = 1.0 / (fan_in ** 0.5)
        w = jax.random.uniform(kw_, (cout, cin, ksz, ksz), jnp.float32,
                               -bound, bound)
        b = jax.random.uniform(kb_, (cout,), jnp.float32, -bound, bound)
        return w, b

    w1, b1 = conv_init(ks[0], ks[1], in_channels, out_channels, kernel_size)
    w2, b2 = conv_init(ks[2], ks[3], out_channels, out_channels, kernel_size)
    params = {
        "out_channels": out_channels,
        "kernel_size": kernel_size,
        "conv1_w": w1, "conv1_b": b1,   # conv biases kept for the reference;
        "conv2_w": w2, "conv2_b": b2,   # they cancel under BN in the kernel
        "bn1_gamma": jnp.ones((out_channels,), jnp.float32),
        "bn1_beta": jnp.zeros((out_channels,), jnp.float32),
        "bn2_gamma": jnp.ones((out_channels,), jnp.float32),
        "bn2_beta": jnp.zeros((out_channels,), jnp.float32),
        "has_skip_conv": in_channels != out_channels,
    }
    if params["has_skip_conv"]:
        ws, bs = conv_init(ks[4], ks[5], in_channels, out_channels, 1)
        params["skip_w"] = ws
        params["skip_b"] = bs
    return params


def phi_net_block_forward(x_nchw, params):
    """Forward pass of PhiNetBlock.  x_nchw: (N, Cin, H, W) -> (N, Cout, H, W)."""
    n, cin, h, w = x_nchw.shape
    cout = params["out_channels"]
    k = params["kernel_size"]
    assert k % 2 == 1, "only odd ('same' padding) kernel sizes supported"
    pad = (k - 1) // 2
    wp = _choose_wp(h, w, pad)          # padded row stride (lane-friendly)
    hwp = h * wp                        # positions per image (incl. wrap cols)
    l3 = (h + k) * wp                   # flattened padded length per image
    head = pad * wp + pad               # flat offset of pixel (0,0) in padded img
    offsets = tuple(di * wp + dj for di in range(k) for dj in range(k))
    inv_count = 1.0 / float(n * h * w)  # real elements per channel for BN
    cinp = _round_up(cin, 8)            # sublane-tile-aligned input channels

    # channel-padded, spatially zero-padded, per-image flattened (NCHW-major)
    xpad = jnp.pad(x_nchw,
                   ((0, 0), (0, cinp - cin),
                    (pad, k - pad),
                    (pad, wp - w - pad))).reshape(n, cinp, l3).astype(jnp.float32)

    def taps_matrix(wconv, cin_logical, cin_padded):
        co = wconv.shape[0]
        wt = jnp.transpose(wconv, (0, 2, 3, 1))              # (Cout, kh, kw, Cin)
        wt = jnp.pad(wt, ((0, 0), (0, 0), (0, 0), (0, cin_padded - cin_logical)))
        return wt.reshape(co, k * k * cin_padded).astype(jnp.float32)

    w1cat = taps_matrix(params["conv1_w"], cin, cinp)        # (Cout, k*k*Cinp)
    w2cat = taps_matrix(params["conv2_w"], cout, cout)       # (Cout, k*k*Cout)

    if params["has_skip_conv"]:
        wskip = params["skip_w"][:, :, 0, 0]
        bskip = params["skip_b"]
    else:
        wskip = jnp.eye(cout, cin, dtype=jnp.float32)        # identity skip
        bskip = jnp.zeros((cout,), jnp.float32)
    wskip = jnp.pad(wskip, ((0, 0), (0, cinp - cin))).astype(jnp.float32)

    bnp = jnp.stack([params["bn1_gamma"], params["bn1_beta"],
                     params["bn2_gamma"], params["bn2_beta"],
                     bskip], axis=1).astype(jnp.float32)      # (Cout, 5)

    colmask = (jnp.arange(wp) < w).astype(jnp.float32)        # (Wp,)
    mask = jnp.tile(colmask, (n * h,)).reshape(1, n * hwp)    # constant under jit

    out_flat = phi_block_fused(xpad, w1cat, w2cat, wskip, bnp, mask,
                               n=n, cout=cout, l3=l3, hwp=hwp, head=head,
                               offsets=offsets, inv_count=inv_count)
    return out_flat.reshape(n, cout, h, wp)[:, :, :, :w]      # NCHW


# --------------------------- pure-JAX reference ------------------------------

def _ref_forward(x, params):
    k = params["kernel_size"]
    pad = (k - 1) // 2

    def conv(inp, wt, b, p):
        out = jax.lax.conv_general_dilated(
            inp, wt, window_strides=(1, 1), padding=[(p, p), (p, p)],
            dimension_numbers=("NCHW", "OIHW", "NCHW"))
        return out + b[None, :, None, None]

    def bn(z, g, be):
        m = jnp.mean(z, axis=(0, 2, 3), keepdims=True)
        v = jnp.mean((z - m) ** 2, axis=(0, 2, 3), keepdims=True)
        zn = (z - m) * jax.lax.rsqrt(v + BN_EPS)
        return zn * g[None, :, None, None] + be[None, :, None, None]

    z1 = conv(x, params["conv1_w"], params["conv1_b"], pad)
    h1 = jnp.maximum(bn(z1, params["bn1_gamma"], params["bn1_beta"]), 0.0)
    z2 = conv(h1, params["conv2_w"], params["conv2_b"], pad)
    if params["has_skip_conv"]:
        skip = conv(x, params["skip_w"], params["skip_b"], 0)
    else:
        skip = x
    return jnp.maximum(bn(z2, params["bn2_gamma"], params["bn2_beta"]) + skip, 0.0)


# ----------------------------------- main ------------------------------------

if __name__ == "__main__":
    key = jax.random.PRNGKey(0)
    pkey, xkey = jax.random.split(key)

    N, C_IN, H, W = 2, 4, 16, 16
    OUT_REQUESTED = 8          # snaps to Fibonacci 8 -> skip is a 1x1 conv

    params = init_params(pkey, C_IN, OUT_REQUESTED, kernel_size=3,
                         phi_optimization=True)
    x = jax.random.normal(xkey, (N, C_IN, H, W), jnp.float32)

    fwd = jax.jit(lambda xx: phi_net_block_forward(xx, params))
    y = jax.block_until_ready(fwd(x))

    y_ref = jax.block_until_ready(_ref_forward(x, params))
    assert y.shape == (N, params["out_channels"], H, W), y.shape
    assert jnp.allclose(y, y_ref, atol=2e-3, rtol=2e-3), (
        "max abs diff = %f" % float(jnp.max(jnp.abs(y - y_ref))))

    print("KERNEL_OK")
</pallas_src>

<mosaic_0001>
module attributes {stable_mosaic.version = 11 : i64} {
  func.func @_phi_block_kernel(%arg0: i32, %arg1: memref<2x8x456xf32, #tpu.memory_space<vmem>>, %arg2: memref<8x72xf32, #tpu.memory_space<vmem>>, %arg3: memref<8x72xf32, #tpu.memory_space<vmem>>, %arg4: memref<8x8xf32, #tpu.memory_space<vmem>>, %arg5: memref<8x5xf32, #tpu.memory_space<vmem>>, %arg6: memref<1x768xf32, #tpu.memory_space<vmem>>, %arg7: memref<2x8x384xf32, #tpu.memory_space<vmem>>) attributes {dimension_semantics = [#tpu.dimension_semantics<arbitrary>], iteration_bounds = array<i64: 1>, scalar_prefetch = 0 : i64, scratch_operands = 0 : i64, tpu.core_type = #tpu.core_type<tc>, window_params = [{pipeline_mode = #tpu.pipeline_mode<synchronous>, transform_indices = @transform_0, window_bounds = array<i64: 2, 8, 456>}, {pipeline_mode = #tpu.pipeline_mode<synchronous>, transform_indices = @transform_1, window_bounds = array<i64: 8, 72>}, {pipeline_mode = #tpu.pipeline_mode<synchronous>, transform_indices = @transform_2, window_bounds = array<i64: 8, 72>}, {pipeline_mode = #tpu.pipeline_mode<synchronous>, transform_indices = @transform_3, window_bounds = array<i64: 8, 8>}, {pipeline_mode = #tpu.pipeline_mode<synchronous>, transform_indices = @transform_4, window_bounds = array<i64: 8, 5>}, {pipeline_mode = #tpu.pipeline_mode<synchronous>, transform_indices = @transform_5, window_bounds = array<i64: 1, 768>}, {pipeline_mode = #tpu.pipeline_mode<synchronous>, transform_indices = @transform_6, window_bounds = array<i64: 2, 8, 384>}]} {
    %c0 = arith.constant 0 : index
    %c0_0 = arith.constant 0 : index
    %0 = vector.load %arg6[%c0, %c0_0] : memref<1x768xf32, #tpu.memory_space<vmem>>, vector<1x768xf32>
    %c0_1 = arith.constant 0 : index
    %c0_2 = arith.constant 0 : index
    %c0_3 = arith.constant 0 : index
    %1 = vector.load %arg1[%c0_1, %c0_2, %c0_3] : memref<2x8x456xf32, #tpu.memory_space<vmem>>, vector<1x8x456xf32>
    %2 = vector.shape_cast %1 : vector<1x8x456xf32> to vector<8x456xf32>
    %3 = vector.extract_strided_slice %2 {offsets = [0, 0], sizes = [8, 384], strides = [1, 1]} : vector<8x456xf32> to vector<8x384xf32>
    %4 = vector.extract_strided_slice %2 {offsets = [0, 1], sizes = [8, 384], strides = [1, 1]} : vector<8x456xf32> to vector<8x384xf32>
    %5 = vector.extract_strided_slice %2 {offsets = [0, 2], sizes = [8, 384], strides = [1, 1]} : vector<8x456xf32> to vector<8x384xf32>
    %6 = vector.extract_strided_slice %2 {offsets = [0, 24], sizes = [8, 384], strides = [1, 1]} : vector<8x456xf32> to vector<8x384xf32>
    %7 = vector.extract_strided_slice %2 {offsets = [0, 25], sizes = [8, 384], strides = [1, 1]} : vector<8x456xf32> to vector<8x384xf32>
    %8 = vector.extract_strided_slice %2 {offsets = [0, 26], sizes = [8, 384], strides = [1, 1]} : vector<8x456xf32> to vector<8x384xf32>
    %9 = vector.extract_strided_slice %2 {offsets = [0, 48], sizes = [8, 384], strides = [1, 1]} : vector<8x456xf32> to vector<8x384xf32>
    %10 = vector.extract_strided_slice %2 {offsets = [0, 49], sizes = [8, 384], strides = [1, 1]} : vector<8x456xf32> to vector<8x384xf32>
    %11 = vector.extract_strided_slice %2 {offsets = [0, 50], sizes = [8, 384], strides = [1, 1]} : vector<8x456xf32> to vector<8x384xf32>
    %12 = tpu.concatenate %3, %4, %5, %6, %7, %8, %9, %10, %11 in 0 : vector<8x384xf32>, vector<8x384xf32>, vector<8x384xf32>, vector<8x384xf32>, vector<8x384xf32>, vector<8x384xf32>, vector<8x384xf32>, vector<8x384xf32>, vector<8x384xf32> -> vector<72x384xf32>
    %c1 = arith.constant 1 : index
    %c0_4 = arith.constant 0 : index
    %c0_5 = arith.constant 0 : index
    %13 = vector.load %arg1[%c1, %c0_4, %c0_5] : memref<2x8x456xf32, #tpu.memory_space<vmem>>, vector<1x8x456xf32>
    %14 = vector.shape_cast %13 : vector<1x8x456xf32> to vector<8x456xf32>
    %15 = vector.extract_strided_slice %14 {offsets = [0, 0], sizes = [8, 384], strides = [1, 1]} : vector<8x456xf32> to vector<8x384xf32>
    %16 = vector.extract_strided_slice %14 {offsets = [0, 1], sizes = [8, 384], strides = [1, 1]} : vector<8x456xf32> to vector<8x384xf32>
    %17 = vector.extract_strided_slice %14 {offsets = [0, 2], sizes = [8, 384], strides = [1, 1]} : vector<8x456xf32> to vector<8x384xf32>
    %18 = vector.extract_strided_slice %14 {offsets = [0, 24], sizes = [8, 384], strides = [1, 1]} : vector<8x456xf32> to vector<8x384xf32>
    %19 = vector.extract_strided_slice %14 {offsets = [0, 25], sizes = [8, 384], strides = [1, 1]} : vector<8x456xf32> to vector<8x384xf32>
    %20 = vector.extract_strided_slice %14 {offsets = [0, 26], sizes = [8, 384], strides = [1, 1]} : vector<8x456xf32> to vector<8x384xf32>
    %21 = vector.extract_strided_slice %14 {offsets = [0, 48], sizes = [8, 384], strides = [1, 1]} : vector<8x456xf32> to vector<8x384xf32>
    %22 = vector.extract_strided_slice %14 {offsets = [0, 49], sizes = [8, 384], strides = [1, 1]} : vector<8x456xf32> to vector<8x384xf32>
    %23 = vector.extract_strided_slice %14 {offsets = [0, 50], sizes = [8, 384], strides = [1, 1]} : vector<8x456xf32> to vector<8x384xf32>
    %24 = tpu.concatenate %15, %16, %17, %18, %19, %20, %21, %22, %23 in 0 : vector<8x384xf32>, vector<8x384xf32>, vector<8x384xf32>, vector<8x384xf32>, vector<8x384xf32>, vector<8x384xf32>, vector<8x384xf32>, vector<8x384xf32>, vector<8x384xf32> -> vector<72x384xf32>
    %25 = tpu.concatenate %12, %24 in 1 : vector<72x384xf32>, vector<72x384xf32> -> vector<72x768xf32>
    %26 = tpu.concatenate %7, %19 in 1 : vector<8x384xf32>, vector<8x384xf32> -> vector<8x768xf32>
    %c0_6 = arith.constant 0 : index
    %c0_7 = arith.constant 0 : index
    %27 = vector.load %arg2[%c0_6, %c0_7] : memref<8x72xf32, #tpu.memory_space<vmem>>, vector<8x72xf32>
    %cst = arith.constant dense<0.000000e+00> : vector<8x768xf32>
    %28 = tpu.matmul %27, %25, %cst {dimension_numbers = #tpu.dot_dimension_numbers<[1], [0], [0], [1], [0, 0, 1, 1], [], []>} : vector<8x72xf32>, vector<72x768xf32>, vector<8x768xf32> -> vector<8x768xf32>
    %29 = vector.broadcast %0 : vector<1x768xf32> to vector<8x768xf32>
    %30 = arith.mulf %28, %29 : vector<8x768xf32>
    %cst_8 = arith.constant dense<0.000000e+00> : vector<8xf32>
    %31 = vector.multi_reduction <add>, %30, %cst_8 [1] : vector<8x768xf32> to vector<8xf32>
    %32 = vector.shape_cast %31 : vector<8xf32> to vector<8x1xf32>
    %cst_9 = arith.constant 0.001953125 : f32
    %33 = vector.broadcast %cst_9 : f32 to vector<8x1xf32>
    %34 = arith.mulf %32, %33 : vector<8x1xf32>
    %35 = vector.broadcast %34 : vector<8x1xf32> to vector<8x768xf32>
    %36 = arith.subf %30, %35 : vector<8x768xf32>
    %37 = vector.broadcast %0 : vector<1x768xf32> to vector<8x768xf32>
    %38 = arith.mulf %36, %37 : vector<8x768xf32>
    %39 = arith.mulf %38, %38 : vector<8x768xf32>
    %cst_10 = arith.constant dense<0.000000e+00> : vector<8xf32>
    %40 = vector.multi_reduction <add>, %39, %cst_10 [1] : vector<8x768xf32> to vector<8xf32>
    %41 = vector.shape_cast %40 : vector<8xf32> to vector<8x1xf32>
    %cst_11 = arith.constant 0.001953125 : f32
    %42 = vector.broadcast %cst_11 : f32 to vector<8x1xf32>
    %43 = arith.mulf %41, %42 : vector<8x1xf32>
    %c0_12 = arith.constant 0 : index
    %c0_13 = arith.constant 0 : index
    %44 = vector.load %arg5[%c0_12, %c0_13] : memref<8x5xf32, #tpu.memory_space<vmem>>, vector<8x1xf32>
    %cst_14 = arith.constant 9.99999974E-6 : f32
    %45 = vector.broadcast %cst_14 : f32 to vector<8x1xf32>
    %46 = arith.addf %43, %45 : vector<8x1xf32>
    %47 = math.rsqrt %46 : vector<8x1xf32>
    %48 = arith.mulf %44, %47 : vector<8x1xf32>
    %c0_15 = arith.constant 0 : index
    %c1_16 = arith.constant 1 : index
    %49 = vector.load %arg5[%c0_15, %c1_16] : memref<8x5xf32, #tpu.memory_space<vmem>>, vector<8x1xf32>
    %50 = arith.mulf %34, %48 : vector<8x1xf32>
    %51 = arith.subf %49, %50 : vector<8x1xf32>
    %52 = vector.broadcast %48 : vector<8x1xf32> to vector<8x768xf32>
    %53 = arith.mulf %30, %52 : vector<8x768xf32>
    %54 = vector.broadcast %51 : vector<8x1xf32> to vector<8x768xf32>
    %55 = arith.addf %53, %54 : vector<8x768xf32>
    %cst_17 = arith.constant 0.000000e+00 : f32
    %56 = vector.broadcast %cst_17 : f32 to vector<8x768xf32>
    %57 = arith.maximumf %55, %56 : vector<8x768xf32>
    %58 = vector.broadcast %0 : vector<1x768xf32> to vector<8x768xf32>
    %59 = arith.mulf %57, %58 : vector<8x768xf32>
    %cst_18 = arith.constant 0.000000e+00 : f32
    %60 = vector.broadcast %cst_18 : f32 to vector<8x25xf32>
    %cst_19 = arith.constant 0.000000e+00 : f32
    %61 = vector.broadcast %cst_19 : f32 to vector<8x47xf32>
    %62 = vector.extract_strided_slice %59 {offsets = [0, 0], sizes = [8, 384], strides = [1, 1]} : vector<8x768xf32> to vector<8x384xf32>
    %63 = tpu.concatenate %60, %62, %61 in 1 : vector<8x25xf32>, vector<8x384xf32>, vector<8x47xf32> -> vector<8x456xf32>
    %64 = vector.extract_strided_slice %63 {offsets = [0, 0], sizes = [8, 384], strides = [1, 1]} : vector<8x456xf32> to vector<8x384xf32>
    %65 = vector.extract_strided_slice %63 {offsets = [0, 1], sizes = [8, 384], strides = [1, 1]} : vector<8x456xf32> to vector<8x384xf32>
    %66 = vector.extract_strided_slice %63 {offsets = [0, 2], sizes = [8, 384], strides = [1, 1]} : vector<8x456xf32> to vector<8x384xf32>
    %67 = vector.extract_strided_slice %63 {offsets = [0, 24], sizes = [8, 384], strides = [1, 1]} : vector<8x456xf32> to vector<8x384xf32>
    %68 = vector.extract_strided_slice %63 {offsets = [0, 25], sizes = [8, 384], strides = [1, 1]} : vector<8x456xf32> to vector<8x384xf32>
    %69 = vector.extract_strided_slice %63 {offsets = [0, 26], sizes = [8, 384], strides = [1, 1]} : vector<8x456xf32> to vector<8x384xf32>
    %70 = vector.extract_strided_slice %63 {offsets = [0, 48], sizes = [8, 384], strides = [1, 1]} : vector<8x456xf32> to vector<8x384xf32>
    %71 = vector.extract_strided_slice %63 {offsets = [0, 49], sizes = [8, 384], strides = [1, 1]} : vector<8x456xf32> to vector<8x384xf32>
    %72 = vector.extract_strided_slice %63 {offsets = [0, 50], sizes = [8, 384], strides = [1, 1]} : vector<8x456xf32> to vector<8x384xf32>
    %73 = tpu.concatenate %64, %65, %66, %67, %68, %69, %70, %71, %72 in 0 : vector<8x384xf32>, vector<8x384xf32>, vector<8x384xf32>, vector<8x384xf32>, vector<8x384xf32>, vector<8x384xf32>, vector<8x384xf32>, vector<8x384xf32>, vector<8x384xf32> -> vector<72x384xf32>
    %74 = vector.extract_strided_slice %59 {offsets = [0, 384], sizes = [8, 384], strides = [1, 1]} : vector<8x768xf32> to vector<8x384xf32>
    %75 = tpu.concatenate %60, %74, %61 in 1 : vector<8x25xf32>, vector<8x384xf32>, vector<8x47xf32> -> vector<8x456xf32>
    %76 = vector.extract_strided_slice %75 {offsets = [0, 0], sizes = [8, 384], strides = [1, 1]} : vector<8x456xf32> to vector<8x384xf32>
    %77 = vector.extract_strided_slice %75 {offsets = [0, 1], sizes = [8, 384], strides = [1, 1]} : vector<8x456xf32> to vector<8x384xf32>
    %78 = vector.extract_strided_slice %75 {offsets = [0, 2], sizes = [8, 384], strides = [1, 1]} : vector<8x456xf32> to vector<8x384xf32>
    %79 = vector.extract_strided_slice %75 {offsets = [0, 24], sizes = [8, 384], strides = [1, 1]} : vector<8x456xf32> to vector<8x384xf32>
    %80 = vector.extract_strided_slice %75 {offsets = [0, 25], sizes = [8, 384], strides = [1, 1]} : vector<8x456xf32> to vector<8x384xf32>
    %81 = vector.extract_strided_slice %75 {offsets = [0, 26], sizes = [8, 384], strides = [1, 1]} : vector<8x456xf32> to vector<8x384xf32>
    %82 = vector.extract_strided_slice %75 {offsets = [0, 48], sizes = [8, 384], strides = [1, 1]} : vector<8x456xf32> to vector<8x384xf32>
    %83 = vector.extract_strided_slice %75 {offsets = [0, 49], sizes = [8, 384], strides = [1, 1]} : vector<8x456xf32> to vector<8x384xf32>
    %84 = vector.extract_strided_slice %75 {offsets = [0, 50], sizes = [8, 384], strides = [1, 1]} : vector<8x456xf32> to vector<8x384xf32>
    %85 = tpu.concatenate %76, %77, %78, %79, %80, %81, %82, %83, %84 in 0 : vector<8x384xf32>, vector<8x384xf32>, vector<8x384xf32>, vector<8x384xf32>, vector<8x384xf32>, vector<8x384xf32>, vector<8x384xf32>, vector<8x384xf32>, vector<8x384xf32> -> vector<72x384xf32>
    %86 = tpu.concatenate %73, %85 in 1 : vector<72x384xf32>, vector<72x384xf32> -> vector<72x768xf32>
    %c0_20 = arith.constant 0 : index
    %c0_21 = arith.constant 0 : index
    %87 = vector.load %arg3[%c0_20, %c0_21] : memref<8x72xf32, #tpu.memory_space<vmem>>, vector<8x72xf32>
    %cst_22 = arith.constant dense<0.000000e+00> : vector<8x768xf32>
    %88 = tpu.matmul %87, %86, %cst_22 {dimension_numbers = #tpu.dot_dimension_numbers<[1], [0], [0], [1], [0, 0, 1, 1], [], []>} : vector<8x72xf32>, vector<72x768xf32>, vector<8x768xf32> -> vector<8x768xf32>
    %89 = vector.broadcast %0 : vector<1x768xf32> to vector<8x768xf32>
    %90 = arith.mulf %88, %89 : vector<8x768xf32>
    %cst_23 = arith.constant dense<0.000000e+00> : vector<8xf32>
    %91 = vector.multi_reduction <add>, %90, %cst_23 [1] : vector<8x768xf32> to vector<8xf32>
    %92 = vector.shape_cast %91 : vector<8xf32> to vector<8x1xf32>
    %cst_24 = arith.constant 0.001953125 : f32
    %93 = vector.broadcast %cst_24 : f32 to vector<8x1xf32>
    %94 = arith.mulf %92, %93 : vector<8x1xf32>
    %95 = vector.broadcast %94 : vector<8x1xf32> to vector<8x768xf32>
    %96 = arith.subf %90, %95 : vector<8x768xf32>
    %97 = vector.broadcast %0 : vector<1x768xf32> to vector<8x768xf32>
    %98 = arith.mulf %96, %97 : vector<8x768xf32>
    %99 = arith.mulf %98, %98 : vector<8x768xf32>
    %cst_25 = arith.constant dense<0.000000e+00> : vector<8xf32>
    %100 = vector.multi_reduction <add>, %99, %cst_25 [1] : vector<8x768xf32> to vector<8xf32>
    %101 = vector.shape_cast %100 : vector<8xf32> to vector<8x1xf32>
    %cst_26 = arith.constant 0.001953125 : f32
    %102 = vector.broadcast %cst_26 : f32 to vector<8x1xf32>
    %103 = arith.mulf %101, %102 : vector<8x1xf32>
    %c0_27 = arith.constant 0 : index
    %c2 = arith.constant 2 : index
    %104 = vector.load %arg5[%c0_27, %c2] : memref<8x5xf32, #tpu.memory_space<vmem>>, vector<8x1xf32>
    %cst_28 = arith.constant 9.99999974E-6 : f32
    %105 = vector.broadcast %cst_28 : f32 to vector<8x1xf32>
    %106 = arith.addf %103, %105 : vector<8x1xf32>
    %107 = math.rsqrt %106 : vector<8x1xf32>
    %108 = arith.mulf %104, %107 : vector<8x1xf32>
    %c0_29 = arith.constant 0 : index
    %c3 = arith.constant 3 : index
    %109 = vector.load %arg5[%c0_29, %c3] : memref<8x5xf32, #tpu.memory_space<vmem>>, vector<8x1xf32>
    %110 = arith.mulf %94, %108 : vector<8x1xf32>
    %111 = arith.subf %109, %110 : vector<8x1xf32>
    %c0_30 = arith.constant 0 : index
    %c4 = arith.constant 4 : index
    %112 = vector.load %arg5[%c0_30, %c4] : memref<8x5xf32, #tpu.memory_space<vmem>>, vector<8x1xf32>
    %113 = arith.addf %111, %112 : vector<8x1xf32>
    %c0_31 = arith.constant 0 : index
    %c0_32 = arith.constant 0 : index
    %114 = vector.load %arg4[%c0_31, %c0_32] : memref<8x8xf32, #tpu.memory_space<vmem>>, vector<8x8xf32>
    %cst_33 = arith.constant dense<0.000000e+00> : vector<8x768xf32>
    %115 = tpu.matmul %114, %26, %cst_33 {dimension_numbers = #tpu.dot_dimension_numbers<[1], [0], [0], [1], [0, 0, 1, 1], [], []>} : vector<8x8xf32>, vector<8x768xf32>, vector<8x768xf32> -> vector<8x768xf32>
    %116 = vector.broadcast %108 : vector<8x1xf32> to vector<8x768xf32>
    %117 = arith.mulf %90, %116 : vector<8x768xf32>
    %118 = vector.broadcast %113 : vector<8x1xf32> to vector<8x768xf32>
    %119 = arith.addf %117, %118 : vector<8x768xf32>
    %120 = arith.addf %119, %115 : vector<8x768xf32>
    %cst_34 = arith.constant 0.000000e+00 : f32
    %121 = vector.broadcast %cst_34 : f32 to vector<8x768xf32>
    %122 = arith.maximumf %120, %121 : vector<8x768xf32>
    %123 = vector.extract_strided_slice %122 {offsets = [0, 0], sizes = [8, 384], strides = [1, 1]} : vector<8x768xf32> to vector<8x384xf32>
    %c0_35 = arith.constant 0 : index
    %c0_36 = arith.constant 0 : index
    %c0_37 = arith.constant 0 : index
    %124 = vector.load %arg7[%c0_35, %c0_36, %c0_37] : memref<2x8x384xf32, #tpu.memory_space<vmem>>, vector<1x8x384xf32>
    %125 = vector.shape_cast %124 : vector<1x8x384xf32> to vector<8x384xf32>
    %126 = vector.shape_cast %123 : vector<8x384xf32> to vector<1x8x384xf32>
    tpu.vector_store %arg7[%c0_35, %c0_36, %c0_37], %126 {strides = array<i32>} : memref<2x8x384xf32, #tpu.memory_space<vmem>>, vector<1x8x384xf32>,
    %127 = vector.extract_strided_slice %122 {offsets = [0, 384], sizes = [8, 384], strides = [1, 1]} : vector<8x768xf32> to vector<8x384xf32>
    %c1_38 = arith.constant 1 : index
    %c0_39 = arith.constant 0 : index
    %c0_40 = arith.constant 0 : index
    %128 = vector.load %arg7[%c1_38, %c0_39, %c0_40] : memref<2x8x384xf32, #tpu.memory_space<vmem>>, vector<1x8x384xf32>
    %129 = vector.shape_cast %128 : vector<1x8x384xf32> to vector<8x384xf32>
    %130 = vector.shape_cast %127 : vector<8x384xf32> to vector<1x8x384xf32>
    tpu.vector_store %arg7[%c1_38, %c0_39, %c0_40], %130 {strides = array<i32>} : memref<2x8x384xf32, #tpu.memory_space<vmem>>, vector<1x8x384xf32>,
    return
  }
  func.func @transform_0(%arg0: i32) -> (i32, i32, i32) {
    %c0_i32 = arith.constant 0 : i32
    %c0_i32_0 = arith.constant 0 : i32
    %c0_i32_1 = arith.constant 0 : i32
    %c0_i32_2 = arith.constant 0 : i32
    return %c0_i32, %c0_i32_0, %c0_i32_1 : i32, i32, i32
  }
  func.func @transform_1(%arg0: i32) -> (i32, i32) {
    %c0_i32 = arith.constant 0 : i32
    %c0_i32_0 = arith.constant 0 : i32
    %c0_i32_1 = arith.constant 0 : i32
    return %c0_i32, %c0_i32_0 : i32, i32
  }
  func.func @transform_2(%arg0: i32) -> (i32, i32) {
    %c0_i32 = arith.constant 0 : i32
    %c0_i32_0 = arith.constant 0 : i32
    %c0_i32_1 = arith.constant 0 : i32
    return %c0_i32, %c0_i32_0 : i32, i32
  }
  func.func @transform_3(%arg0: i32) -> (i32, i32) {
    %c0_i32 = arith.constant 0 : i32
    %c0_i32_0 = arith.constant 0 : i32
    %c0_i32_1 = arith.constant 0 : i32
    return %c0_i32, %c0_i32_0 : i32, i32
  }
  func.func @transform_4(%arg0: i32) -> (i32, i32) {
    %c0_i32 = arith.constant 0 : i32
    %c0_i32_0 = arith.constant 0 : i32
    %c0_i32_1 = arith.constant 0 : i32
    return %c0_i32, %c0_i32_0 : i32, i32
  }
  func.func @transform_5(%arg0: i32) -> (i32, i32) {
    %c0_i32 = arith.constant 0 : i32
    %c0_i32_0 = arith.constant 0 : i32
    %c0_i32_1 = arith.constant 0 : i32
    return %c0_i32, %c0_i32_0 : i32, i32
  }
  func.func @transform_6(%arg0: i32) -> (i32, i32, i32) {
    %c0_i32 = arith.constant 0 : i32
    %c0_i32_0 = arith.constant 0 : i32
    %c0_i32_1 = arith.constant 0 : i32
    %c0_i32_2 = arith.constant 0 : i32
    return %c0_i32, %c0_i32_0, %c0_i32_1 : i32, i32, i32
  }
}

</mosaic_0001>

<bundles_post_ra>
// kernel: tile.8
= control target key start
LH: loop header
LB: loop body
LE: loop exit
PB: predicated region body
PF: predicated region fallthrough
CT: control target
= control target key end

     0   :  { %s40_s0 = inlined_call_operand.vmem [shape: f32[24], index: 0, kind: input, shape index: {}]   ;;  %s41_s1 = inlined_call_operand.vmem [shape: f32[32,24], index: 1, kind: output, shape index: {}]  }
   0x1   :  { %v4_v0 = vld [vmem:[%s40_s0] ss:$0 sm:$0xff] }
   0x2   :  { %5 = vst [vmem:[%s41_s1] sm:$0xff] %v4_v0 }
   0x3   :  { %12 = vst [vmem:[%s41_s1 + $0x8] sm:$0xff] %v4_v0 }
   0x4   :  { %13 = vst [vmem:[%s41_s1 + $0x10] sm:$0xff] %v4_v0 }
   0x5   :  { %14 = vst [vmem:[%s41_s1 + $0x18] sm:$0xff] %v4_v0 }

// kernel: tile.9
= control target key start
LH: loop header
LB: loop body
LE: loop exit
PB: predicated region body
PF: predicated region fallthrough
CT: control target
= control target key end

     0   :  { %s38_s6 = smov 3  ;;  %s7_s9 = smov 3  ;;  %vm12_vm0 = vcmask 64512   ;;  %vm16_vm1 = vcmask 130048   ;;  %vm4_vm2 = vcmask 195584   ;;  %vm19_vm3 = vcmask 1048512   ;;  %s311_s0 = inlined_call_operand.vmem [shape: f32[32,24], index: 0, kind: input, shape index: {}]   ;;  %s312_s1 = inlined_call_operand.vmem [shape: f32[1,768], index: 1, kind: output, shape index: {}]  }
   0x1   :  { %v177_v0 = vld [vmem:[%s311_s0 + $0x1f] ss:$-16 sm:%s38_s6]   ;;  %s10_s10 = smov 3  ;;  %s210_s11 = smov 104   ;;  %v173_v1 = vld [vmem:[%s311_s0 + $0x15] ss:$-16 sm:%s7_s9]  }
   0x2   :  { %40 = vrot.lane.b32.xlu1 %v177_v0, %s210_s11  ;;  %v174_v2 = vld [vmem:[%s311_s0 + $0x5] ss:$16 sm:%s10_s10]   ;;  %s46_s16 = smov 3  ;;  %s22_s17 = smov 3  ;;  %vm50_vm4 = vcmask 982784   ;;  %vm34_vm5 = vcmask 1048448  }
   0x3   :  { %v13_v3 = vsel %vm12_vm0, %v174_v2, %v173_v1  ;;  %s25_s18 = smov 3  ;;  %s211_s19 = smov 120   ;;  %v178_v4 = vld [vmem:[%s311_s0 + $0x4] ss:$16 sm:%s46_s16]   ;;  %v175_v5 = vld [vmem:[%s311_s0 + $0x1a] ss:$-16 sm:%s22_s17]  }
   0x4   :  { %14 = vrot.lane.b32.xlu0 %v13_v3, %s211_s19  ;;  %v176_v6 = vld [vmem:[%s311_s0 + $0x1a] ss:$-16 sm:%s25_s18]   ;;  %s53_s26 = smov 3  ;;  %s212_s29 = smov 88   ;;  %vm42_vm6 = vcmask 1048384   ;;  %vm57_vm7 = vcmask 917184  }
   0x5   :  { %v179_v7 = vld [vmem:[%s311_s0 + $0x19] ss:$-16 sm:%s53_s26]   ;;  %s213_s30 = smov 96   ;;  %v28_v8 = vsel %vm16_vm1, %v176_v6, %v175_v5  ;;  %s61_s2 = smov 3  ;;  %vm65_vm8 = vcmask 851584   ;;  %vm88_vm9 = vcmask 654784  }
   0x6   :  { %55 = vrot.lane.b32.xlu2 %v179_v7, %s212_s29  ;;  %s76_s3 = smov 3  ;;  %s214_s4 = smov 112   ;;  %v180_v9 = vld [vmem:[%s311_s0 + $0x1e] ss:$-16 sm:%s61_s2]   ;;  %vm80_vm10 = vcmask 720384   ;;  %vm111_vm11 = vcmask 457984  }
   0x7   :  { %v182_v10 = vld [vmem:[%s311_s0 + $0x18] ss:$-16 sm:%s76_s3]   ;;  %s69_s9 = smov 3  ;;  %s215_s10 = smov 80   ;;  %vm73_vm12 = vcmask 785984   ;;  %vm134_vm13 = vcmask 261184  }
   0x8   :  { %s216_s11 = smov 64   ;;  %v181_v11 = vld [vmem:[%s311_s0 + $0x3] ss:$16 sm:%s69_s9]   ;;  %s84_s14 = smov 3  ;;  %vm103_vm14 = vcmask 523584   ;;  %vm96_vm15 = vcmask 589184  }
   0x9   :  { %s99_s15 = smov 3  ;;  %s217_s16 = smov 72   ;;  %v183_v12 = vld [vmem:[%s311_s0 + $0x1d] ss:$-16 sm:%s84_s14]  }
   0xa   :  { %48 = vrot.lane.b32.xlu1 %v178_v4, %s213_s30  ;;  %v185_v13 = vld [vmem:[%s311_s0 + $0x17] ss:$-16 sm:%s99_s15]   ;;  %s92_s21 = smov 3  ;;  %s218_s22 = smov 56  }
   0xb   :  { %s219_s23 = smov 40   ;;  %v184_v14 = vld [vmem:[%s311_s0 + $0x2] ss:$16 sm:%s92_s21]   ;;  %s107_s26 = smov 3 }
   0xc   :  { %29 = vrot.lane.b32.xlu0 %v28_v8, %s214_s4  ;;  %s122_s27 = smov 3  ;;  %s220_s28 = smov 48   ;;  %v186_v15 = vld [vmem:[%s311_s0 + $0x1c] ss:$-16 sm:%s107_s26]  }
   0xd   :  { %v188_v16 = vld [vmem:[%s311_s0 + $0x16] ss:$-16 sm:%s122_s27]   ;;  %s115_s4 = smov 3  ;;  %s221_s5 = smov 32  }
   0xe   :  { %63 = vrot.lane.b32.xlu2 %v180_v9, %s215_s10  ;;  %s222_s6 = smov 16   ;;  %v187_v17 = vld [vmem:[%s311_s0 + $0x1] ss:$16 sm:%s115_s4]   ;;  %s130_s9 = smov 3 }
   0xf   :  { %s223_s10 = smov 24   ;;  %v189_v18 = vld [vmem:[%s311_s0 + $0x1b] ss:$-16 sm:%s130_s9]   ;;  %s224_s13 = smov 8  }
  0x10   :  { %s2_s14 = smov 3 }
  0x11   :  { %v3_v19 = vld [vmem:[%s311_s0] ss:$16 sm:%s2_s14]  }
  0x12   :  { %78 = vrot.lane.b32.xlu1 %v182_v10, %s216_s11  ;;  %5 = vst.msk [vmem:[#allocation0] ss:$24 sm:$0x3] %vm4_vm2, %v3_v19  }
  0x14   :  { %71 = vrot.lane.b32.xlu0 %v181_v11, %s217_s16 }
  0x16   :  { %86 = vrot.lane.b32.xlu2 %v183_v12, %s218_s22 }
  0x1a   :  { %101 = vrot.lane.b32.xlu1 %v185_v13, %s219_s23 }
  0x1c   :  { %94 = vrot.lane.b32.xlu0 %v184_v14, %s220_s28 }
  0x1e   :  { %109 = vrot.lane.b32.xlu2 %v186_v15, %s221_s5 }
  0x22   :  { %124 = vrot.lane.b32.xlu1 %v188_v16, %s222_s6 }
  0x24   :  { %117 = vrot.lane.b32.xlu0 %v187_v17, %s223_s10 }
  0x26   :  { %132 = vrot.lane.b32.xlu2 %v189_v18, %s224_s13 }
  0x60   :  { %v56_v20 = vpop.permute.xlu2 %55  }
  0x68   :  { %v64_v21 = vpop.permute.xlu2 %63  }
  0x70   :  { %v87_v22 = vpop.permute.xlu2 %86  }
  0x74   :  { %v41_v23 = vpop.permute.xlu1 %40  }
  0x76   :  { %v15_v24 = vpop.permute.xlu0 %14  }
  0x77   :  { %18 = vst.msk [vmem:[#allocation0 + $0x20] ss:$-24 sm:$0x3] %vm16_vm1, %v15_v24   ;;  %vm119_vm1 = vcmask 392384  }
  0x78   :  { %20 = vst.msk [vmem:[#allocation0] ss:$24 sm:$0x3] %vm19_vm3, %v15_v24   ;;  %v110_v25 = vpop.permute.xlu2 %109  }
  0x7c   :  { %v49_v26 = vpop.permute.xlu1 %48  }
  0x7d   :  { %51 = vst.msk [vmem:[#allocation0] ss:$24 sm:$0x3] %vm50_vm4, %v49_v26  }
  0x7e   :  { %v30_v27 = vpop.permute.xlu0 %29  }
  0x7f   :  { %33 = vst.msk [vmem:[#allocation0 + $0x28] ss:$-24 sm:$0x3] %vm12_vm0, %v30_v27   ;;  %vm126_vm0 = vcmask 326784  }
  0x80   :  { %36 = vst.msk [vmem:[#allocation0 + $0x20] ss:$-24 sm:$0x3] %vm34_vm5, %v30_v27   ;;  %v133_v28 = vpop.permute.xlu2 %132  }
  0x81   :  { %44 = vst.msk [vmem:[#allocation0 + $0x28] ss:$-24 sm:$0x3] %vm42_vm6, %v41_v23  }
  0x82   :  { %59 = vst.msk [vmem:[#allocation0 + $0x20] ss:$-24 sm:$0x3] %vm57_vm7, %v56_v20  }
  0x83   :  { %67 = vst.msk [vmem:[#allocation0 + $0x28] ss:$-24 sm:$0x3] %vm65_vm8, %v64_v21  }
  0x84   :  { %v79_v29 = vpop.permute.xlu1 %78   ;;  %90 = vst.msk [vmem:[#allocation0 + $0x28] ss:$-24 sm:$0x3] %vm88_vm9, %v87_v22  }
  0x85   :  { %82 = vst.msk [vmem:[#allocation0 + $0x20] ss:$-24 sm:$0x3] %vm80_vm10, %v79_v29  }
  0x86   :  { %v72_v30 = vpop.permute.xlu0 %71   ;;  %113 = vst.msk [vmem:[#allocation0 + $0x28] ss:$-24 sm:$0x3] %vm111_vm11, %v110_v25  }
  0x87   :  { %74 = vst.msk [vmem:[#allocation0] ss:$24 sm:$0x3] %vm73_vm12, %v72_v30  }
  0x88   :  { %136 = vst.msk [vmem:[#allocation0 + $0x28] ss:$-24 sm:$0x3] %vm134_vm13, %v133_v28  }
  0x8c   :  { %v102_v31 = vpop.permute.xlu1 %101  }
  0x8d   :  { %105 = vst.msk [vmem:[#allocation0 + $0x20] ss:$-24 sm:$0x3] %vm103_vm14, %v102_v31  }
  0x8e   :  { %v95_v32 = vpop.permute.xlu0 %94  }
  0x8f   :  { %97 = vst.msk [vmem:[#allocation0] ss:$24 sm:$0x3] %vm96_vm15, %v95_v32   ;;  %v150_v33 = vld [vmem:[#allocation0 + $0x10] sm:$0x1] }
  0x90   :  { %191 = vst [vmem:[%s312_s1 + $0x2] sm:$0x1] %v150_v33  ;;  %v168_v34 = vld [vmem:[#allocation0 + $0x28] sm:$0x1] }
  0x91   :  { %194 = vst [vmem:[%s312_s1 + $0x5] sm:$0x1] %v168_v34 }
  0x94   :  { %v125_v35 = vpop.permute.xlu1 %124  }
  0x95   :  { %128 = vst.msk [vmem:[#allocation0 + $0x20] ss:$-24 sm:$0x3] %vm126_vm0, %v125_v35  }
  0x96   :  { %v118_v36 = vpop.permute.xlu0 %117  }
  0x97   :  { %120 = vst.msk [vmem:[#allocation0] ss:$24 sm:$0x3] %vm119_vm1, %v118_v36  }
  0x9c   :  { %v144_v37 = vld [vmem:[#allocation0 + $0x8] sm:$0x1]  ;;  %v162_v38 = vld [vmem:[#allocation0 + $0x20] sm:$0x1] }
  0x9d   :  { %190 = vst [vmem:[%s312_s1 + $0x1] sm:$0x1] %v144_v37 }
  0x9e   :  { %193 = vst [vmem:[%s312_s1 + $0x4] sm:$0x1] %v162_v38  ;;  %v139_v39 = vld [vmem:[#allocation0] sm:$0x1]  ;;  %v156_v40 = vld [vmem:[#allocation0 + $0x18] sm:$0x1] }
  0x9f   :  { %142 = vst [vmem:[%s312_s1] sm:$0x1] %v139_v39 }
  0xa0   :  { %192 = vst [vmem:[%s312_s1 + $0x3] sm:$0x1] %v156_v40 }

// kernel: _lambda_.1
= control target key start
LH: loop header
LB: loop body
LE: loop exit
PB: predicated region body
PF: predicated region fallthrough
CT: control target
= control target key end

     0   :  { %s1505_s29 = smov 80   ;;  %s1506_s30 = smov 78   ;;  %vm145_vm0 = vcmask 637952   ;;  %vm130_vm1 = vcmask 646144   ;;  %vm115_vm2 = vcmask 654336   ;;  %vm100_vm3 = vcmask 834560   ;;  %s2154_s0 = inlined_call_operand.vmem [shape: f32[2,8,456], index: 0, kind: input, shape index: {}]   ;;  %s2155_s1 = inlined_call_operand.vmem [shape: f32[8,72], index: 1, kind: input, shape index: {}]   ;;  %s2156_s5 = inlined_call_operand.vmem [shape: f32[1,768], index: 5, kind: input, shape index: {}]   ;;  %s2157_s4 = inlined_call_operand.vmem [shape: f32[8,5], index: 4, kind: input, shape index: {}]   ;;  %s2158_s2 = inlined_call_operand.vmem [shape: f32[8,72], index: 2, kind: input, shape index: {}]   ;;  %s2159_s3 = inlined_call_operand.vmem [shape: f32[8,8], index: 3, kind: input, shape index: {}]   ;;  %s2160_s6 = inlined_call_operand.vmem [shape: f32[2,8,384], index: 6, kind: output, shape index: {}]  }
   0x1   :  { %v1557_v0 = vld [vmem:[%s2154_s0 + $0x10] sm:$0xff]  ;;  %v27_v1 = vld [vmem:[%s2154_s0 + $0x18] sm:$0xff]  ;;  %v1565_v2 = vld [vmem:[%s2154_s0] sm:$0xff]  ;;  %s1507_s11 = smov 79   ;;  %s1508_s12 = smov 102   ;;  %vm85_vm4 = vcmask 842752  }
   0x2   :  { %v1187_v3 = vpack.i.bf16 %v27_v1, %v1557_v0  ;;  %v1571_v4 = vld [vmem:[%s2154_s0 + $0x8] sm:$0xff]  ;;  %v1581_v6 = vld [vmem:[%s2154_s0 + $0x20] sm:$0xff]  ;;  %s1509_s13 = smov 103   ;;  %s1510_s14 = smov 104   ;;  %v1605_v9 = vld [vmem:[%s2154_s0 + $0x30] sm:$0xff]  ;;  %vm70_vm5 = vcmask 850944  }
   0x3   :  { %v1177_v5 = vpack.i.bf16 %v1571_v4, %v1565_v2  ;;  %v1586_v7 = vld [vmem:[%s2154_s0 + $0x28] sm:$0xff]  ;;  %v1127_v10 = vld [vmem:[%s2154_s0 + $0x38] sm:$0xff]  ;;  %s1511_s19 = smov 126   ;;  %s1512_s20 = smov 127   ;;  %vm55_vm6 = vcmask 1031168   ;;  %vm40_vm7 = vcmask 1039360  }
   0x4   :  { %1188 = vrot.lane.b32.xlu2 %v1187_v3, %s1505_s29  ;;  %1168 = vrot.lane.b32.xlu0 %v1187_v3, %s1506_s30  ;;  %v1182_v8 = vpack.i.bf16 %v1586_v7, %v1581_v6  ;;  %v1247_v11 = vpack.i.bf16 %v1127_v10, %v1605_v9  ;;  %vm274_vm8 = vcmask 588800   ;;  %s1514_s24 = smov 1   ;;  %vm513_vm12 = vcmask 203776  }
   0x5   :  { %1178 = vrot.lane.b32.xlu1 %v1177_v5, %s1506_s30  ;;  %vm1986_vm13 = vmneg %vm513_vm12  ;;  %vm955_vm14 = vcmask 64512  }
   0xc   :  { %1173 = vrot.lane.b32.xlu0 %v1187_v3, %s1507_s11  ;;  %1193 = vrot.lane.b32.xlu2 %v1177_v5, %s1507_s11 }
   0xd   :  { %1183 = vrot.lane.b32.xlu1 %v1182_v8, %s1506_s30 }
  0x14   :  { %1198 = vrot.lane.b32.xlu0 %v1182_v8, %s1507_s11  ;;  %1208 = vrot.lane.b32.xlu2 %v1177_v5, %s1505_s29 }
  0x15   :  { %1203 = vrot.lane.b32.xlu1 %v1187_v3, %s1508_s12 }
  0x1c   :  { %1213 = vrot.lane.b32.xlu0 %v1182_v8, %s1505_s29  ;;  %1223 = vrot.lane.b32.xlu2 %v1177_v5, %s1508_s12 }
  0x1d   :  { %1218 = vrot.lane.b32.xlu1 %v1187_v3, %s1509_s13 }
  0x24   :  { %1228 = vrot.lane.b32.xlu0 %v1182_v8, %s1508_s12  ;;  %1238 = vrot.lane.b32.xlu2 %v1177_v5, %s1509_s13 }
  0x25   :  { %1233 = vrot.lane.b32.xlu1 %v1187_v3, %s1510_s14 }
  0x2c   :  { %1243 = vrot.lane.b32.xlu0 %v1182_v8, %s1509_s13  ;;  %1253 = vrot.lane.b32.xlu2 %v1187_v3, %s1511_s19 }
  0x2d   :  { %1248 = vrot.lane.b32.xlu1 %v1247_v11, %s1506_s30 }
  0x34   :  { %1258 = vrot.lane.b32.xlu0 %v1177_v5, %s1510_s14  ;;  %1268 = vrot.lane.b32.xlu2 %v1247_v11, %s1507_s11 }
  0x35   :  { %1263 = vrot.lane.b32.xlu1 %v1182_v8, %s1510_s14 }
  0x3c   :  { %1273 = vrot.lane.b32.xlu0 %v1187_v3, %s1512_s20  ;;  %1283 = vrot.lane.b32.xlu2 %v1182_v8, %s1511_s19 }
  0x3d   :  { %1278 = vrot.lane.b32.xlu1 %v1177_v5, %s1511_s19 }
  0x44   :  { %1288 = vrot.lane.b32.xlu0 %v1247_v11, %s1505_s29  ;;  %1298 = vrot.lane.b32.xlu2 %v1182_v8, %s1512_s20 }
  0x45   :  { %1293 = vrot.lane.b32.xlu1 %v1177_v5, %s1512_s20 }
  0x4c   :  { %1303 = vrot.lane.b32.xlu0 %v1247_v11, %s1508_s12  ;;  %1313 = vrot.lane.b32.xlu2 %v1247_v11, %s1510_s14 }
  0x4d   :  { %1308 = vrot.lane.b32.xlu1 %v1247_v11, %s1509_s13 }
  0x54   :  { %1318 = vrot.lane.b32.xlu0 %v1247_v11, %s1511_s19 }
  0x55   :  { %1323 = vrot.lane.b32.xlu1 %v1247_v11, %s1512_s20 }
  0x5e   :  { %v1189_v12 = vpop.permute.xlu2 %1188 }
  0x5f   :  { %v1191_v33 = vunpack.i.h.bf16 %v1189_v12  ;;  %v1190_v34 = vunpack.i.l.bf16 %v1189_v12 }
  0x61   :  { %v118_v50 = vsel %vm115_vm2, %v1190_v34, %v1191_v33 }
  0x66   :  { %v1194_v13 = vpop.permute.xlu2 %1193 }
  0x67   :  { %v1195_v15 = vunpack.i.l.bf16 %v1194_v13  ;;  %v1196_v18 = vunpack.i.h.bf16 %v1194_v13 }
  0x69   :  { %v131_v26 = vsel %vm130_vm1, %v1195_v15, %v1196_v18 }
  0x6e   :  { %v1209_v14 = vpop.permute.xlu2 %1208 }
  0x6f   :  { %v1210_v22 = vunpack.i.l.bf16 %v1209_v14  ;;  %v1211_v27 = vunpack.i.h.bf16 %v1209_v14 }
  0x71   :  { %v116_v32 = vsel %vm115_vm2, %v1210_v22, %v1211_v27  ;;  %v117_v49 = vsel %vm115_vm2, %v1211_v27, %v1190_v34 }
  0x76   :  { %v1169_v16 = vpop.permute.xlu0 %1168  ;;  %v1224_v17 = vpop.permute.xlu2 %1223 }
  0x77   :  { %v1171_v19 = vunpack.i.h.bf16 %v1169_v16  ;;  %v1170_v20 = vunpack.i.l.bf16 %v1169_v16  ;;  %v1179_v21 = vpop.permute.xlu1 %1178  ;;  %v1225_v28 = vunpack.i.l.bf16 %v1224_v17  ;;  %v1226_v31 = vunpack.i.h.bf16 %v1224_v17 }
  0x78   :  { %v1181_v23 = vunpack.i.h.bf16 %v1179_v21  ;;  %v1180_v24 = vunpack.i.l.bf16 %v1179_v21 }
  0x79   :  { %v148_v25 = vsel %vm145_vm0, %v1170_v20, %v1171_v19  ;;  %v101_v37 = vsel %vm100_vm3, %v1225_v28, %v1226_v31 }
  0x7a   :  { %v147_v29 = vsel %vm145_vm0, %v1181_v23, %v1170_v20  ;;  %325 = vmatpush.msra.mxu2 %v148_v25  ;;  %v146_v30 = vsel %vm145_vm0, %v1180_v24, %v1181_v23 }
  0x7b   :  { %305 = vmatpush.msra.mxu1 %v147_v29  ;;  %285 = vmatpush.msra.mxu0 %v146_v30 }
  0x7d   :  { %286 = vmatpush.msra.mxu0 %v131_v26 }
  0x7e   :  { %v1174_v35 = vpop.permute.xlu0 %1173  ;;  %v1239_v36 = vpop.permute.xlu2 %1238 }
  0x7f   :  { %v1176_v38 = vunpack.i.h.bf16 %v1174_v35  ;;  %v1175_v39 = vunpack.i.l.bf16 %v1174_v35  ;;  %v1241_v40 = vunpack.i.h.bf16 %v1239_v36  ;;  %v1240_v41 = vunpack.i.l.bf16 %v1239_v36  ;;  %v1634_v42 = vpop.permute.xlu1 %1183  ;;  %287 = vmatpush.msra.mxu0 %v116_v32 }
  0x80   :  { %v1186_v43 = vunpack.i.h.bf16 %v1634_v42  ;;  %v1185_v44 = vunpack.i.l.bf16 %v1634_v42 }
  0x81   :  { %v132_v45 = vsel %vm130_vm1, %v1196_v18, %v1175_v39  ;;  %v133_v46 = vsel %vm130_vm1, %v1175_v39, %v1176_v38  ;;  %288 = vmatpush.msra.mxu0 %v101_v37  ;;  %v1641_v47 = vsel %vm85_vm4, %v1240_v41, %v1241_v40 }
  0x82   :  { %306 = vmatpush.msra.mxu1 %v132_v45  ;;  %326 = vmatpush.msra.mxu2 %v133_v46  ;;  %v267_v48 = vsel %vm145_vm0, %v1185_v44, %v1186_v43 }
  0x83   :  { %345 = vmatpush.msra.mxu3 %v267_v48  ;;  %289 = vmatpush.msra.mxu0 %v1641_v47 }
  0x84   :  { %307 = vmatpush.msra.mxu1 %v117_v49  ;;  %327 = vmatpush.msra.mxu2 %v118_v50 }
  0x86   :  { %v1649_v51 = vpop.permute.xlu0 %1198  ;;  %v1653_v57 = vpop.permute.xlu2 %1253 }
  0x87   :  { %v1201_v52 = vunpack.i.h.bf16 %v1649_v51  ;;  %v1200_v53 = vunpack.i.l.bf16 %v1649_v51  ;;  %v1204_v54 = vpop.permute.xlu1 %1203  ;;  %v1256_v13 = vunpack.i.h.bf16 %v1653_v57  ;;  %v1255_v14 = vunpack.i.l.bf16 %v1653_v57 }
  0x88   :  { %v1206_v55 = vunpack.i.h.bf16 %v1204_v54  ;;  %v1205_v56 = vunpack.i.l.bf16 %v1204_v54 }
  0x89   :  { %v253_v58 = vsel %vm130_vm1, %v1200_v53, %v1201_v52  ;;  %v58_v23 = vsel %vm55_vm6, %v1255_v14, %v1256_v13 }
  0x8a   :  { %346 = vmatpush.msra.mxu3 %v253_v58  ;;  %v102_v59 = vsel %vm100_vm3, %v1226_v31, %v1205_v56  ;;  %v103_v60 = vsel %vm100_vm3, %v1205_v56, %v1206_v55  ;;  %v1727_v58 = vld [vmem:[%s2155_s1] sm:$0xff] }
  0x8b   :  { %308 = vmatpush.msra.mxu1 %v102_v59  ;;  %328 = vmatpush.msra.mxu2 %v103_v60 }
  0x8e   :  { %v1660_v61 = vpop.permute.xlu0 %1213  ;;  %v1673_v12 = vpop.permute.xlu2 %1268 }
  0x8f   :  { %v1216_v62 = vunpack.i.h.bf16 %v1660_v61  ;;  %v1215_v63 = vunpack.i.l.bf16 %v1660_v61  ;;  %v1219_v1 = vpop.permute.xlu1 %1218 }
  0x90   :  { %v1221_v3 = vunpack.i.h.bf16 %v1219_v1  ;;  %v1220_v5 = vunpack.i.l.bf16 %v1219_v1 }
  0x91   :  { %v239_v8 = vsel %vm115_vm2, %v1215_v63, %v1216_v62 }
  0x92   :  { %347 = vmatpush.msra.mxu3 %v239_v8  ;;  %v1668_v10 = vsel %vm85_vm4, %v1241_v40, %v1220_v5  ;;  %v1671_v11 = vsel %vm85_vm4, %v1220_v5, %v1221_v3 }
  0x93   :  { %309 = vmatpush.msra.mxu1 %v1668_v10  ;;  %329 = vmatpush.msra.mxu2 %v1671_v11 }
  0x96   :  { %v1679_v15 = vpop.permute.xlu0 %1228  ;;  %v1688_v24 = vpop.permute.xlu2 %1283 }
  0x97   :  { %v1231_v16 = vunpack.i.h.bf16 %v1679_v15  ;;  %v1230_v17 = vunpack.i.l.bf16 %v1679_v15  ;;  %v1234_v18 = vpop.permute.xlu1 %1233  ;;  %v1286_v30 = vunpack.i.h.bf16 %v1688_v24  ;;  %v1285_v31 = vunpack.i.l.bf16 %v1688_v24  ;;  %v23_v24 = vld [vmem:[%s2156_s5] sm:$0x3f] }
  0x98   :  { %v1236_v19 = vunpack.i.h.bf16 %v1234_v18  ;;  %v1235_v20 = vunpack.i.l.bf16 %v1234_v18  ;;  %v1270_v18 = vunpack.i.l.bf16 %v1673_v12 }
  0x99   :  { %v225_v21 = vsel %vm100_vm3, %v1230_v17, %v1231_v16  ;;  %v183_v46 = vsel %vm55_vm6, %v1285_v31, %v1286_v30  ;;  %v1271_v17 = vunpack.i.h.bf16 %v1673_v12 }
  0x9a   :  { %348 = vmatpush.msra.mxu3 %v225_v21  ;;  %v73_v22 = vsel %vm70_vm5, %v1235_v20, %v1236_v19  ;;  %v254_v31 = vsel %vm130_vm1, %v1201_v52, %v1270_v18 }
  0x9b   :  { %330 = vmatpush.msra.mxu2 %v73_v22 }
  0x9d   :  { %331 = vmatpush.msra.mxu2 %v58_v23 }
  0x9e   :  { %v1690_v25 = vpop.permute.xlu0 %1243  ;;  %v1704_v33 = vpop.permute.xlu2 %1298 }
  0x9f   :  { %v1246_v26 = vunpack.i.h.bf16 %v1690_v25  ;;  %v1245_v27 = vunpack.i.l.bf16 %v1690_v25  ;;  %v1694_v28 = vpop.permute.xlu1 %1248  ;;  %v1301_v37 = vunpack.i.h.bf16 %v1704_v33  ;;  %v1300_v38 = vunpack.i.l.bf16 %v1704_v33 }
  0xa0   :  { %v1250_v8 = vunpack.i.l.bf16 %v1694_v28  ;;  %v1798_v33 = vperm.slane %v23_v24, 1 }
  0xa1   :  { %v1699_v29 = vsel %vm85_vm4, %v1245_v27, %v1246_v26  ;;  %v169_v48 = vsel %vm40_vm7, %v1300_v38, %v1301_v37 }
  0xa2   :  { %349 = vmatpush.msra.mxu3 %v1699_v29 }
  0xa6   :  { %v1259_v32 = vpop.permute.xlu0 %1258  ;;  %v1314_v23 = vpop.permute.xlu2 %1313 }
  0xa7   :  { %v1261_v34 = vunpack.i.h.bf16 %v1259_v32  ;;  %v1260_v35 = vunpack.i.l.bf16 %v1259_v32  ;;  %v1706_v36 = vpop.permute.xlu1 %1263 }
  0xa8   :  { %v1266_v39 = vunpack.i.h.bf16 %v1706_v36  ;;  %v1265_v40 = vunpack.i.l.bf16 %v1706_v36 }
  0xa9   :  { %v71_v41 = vsel %vm70_vm5, %v1260_v35, %v1261_v34  ;;  %v72_v44 = vsel %vm70_vm5, %v1261_v34, %v1235_v20  ;;  %v268_v20 = vsel %vm145_vm0, %v1186_v43, %v1250_v8  ;;  %v1315_v35 = vunpack.i.l.bf16 %v1314_v23 }
  0xaa   :  { %290 = vmatpush.msra.mxu0 %v71_v41  ;;  %310 = vmatpush.msra.mxu1 %v72_v44  ;;  %v197_v45 = vsel %vm70_vm5, %v1265_v40, %v1266_v39 }
  0xab   :  { %350 = vmatpush.msra.mxu3 %v197_v45  ;;  %v198_v44 = vsel %vm70_vm5, %v1266_v39, %v1315_v35 }
  0xad   :  { %351 = vmatpush.msra.mxu3 %v183_v46 }
  0xae   :  { %v1274_v49 = vpop.permute.xlu0 %1273 }
  0xaf   :  { %v1276_v50 = vunpack.i.h.bf16 %v1274_v49  ;;  %v1275_v53 = vunpack.i.l.bf16 %v1274_v49  ;;  %v1279_v54 = vpop.permute.xlu1 %1278  ;;  %352 = vmatpush.msra.mxu3 %v169_v48  ;;  %v1806_v49 = vperm.slane %v23_v24, 2 }
  0xb0   :  { %v1281_v55 = vunpack.i.h.bf16 %v1279_v54  ;;  %v1280_v56 = vunpack.i.l.bf16 %v1279_v54 }
  0xb1   :  { %v43_v57 = vsel %vm40_vm7, %v1275_v53, %v1276_v50  ;;  %353 = vmatpush.msra.mxu3 %v1581_v6  ;;  %v1251_v6 = vunpack.i.h.bf16 %v1694_v28 }
  0xb2   :  { %v57_v59 = vsel %vm55_vm6, %v1281_v55, %v1255_v14  ;;  %332 = vmatpush.msra.mxu2 %v43_v57  ;;  %v56_v60 = vsel %vm55_vm6, %v1280_v56, %v1281_v55  ;;  %1131 = vmatmul.msk.f32.vlgmr.msra.gmra.mxu3 %vm274_vm8, %v1727_v58  ;;  %v1813_v55 = vperm.slane %v23_v24, 3 }
  0xb3   :  { %311 = vmatpush.msra.mxu1 %v57_v59  ;;  %291 = vmatpush.msra.mxu0 %v56_v60  ;;  %v269_v21 = vsel %vm145_vm0, %v1250_v8, %v1251_v6  ;;  %v1819_v59 = vperm.slane %v23_v24, 4  ;;  %v1821_v60 = vperm.slane %v23_v24, 5 }
  0xb4   :  { %333 = vmatpush.msra.mxu2 %v1557_v0 }
  0xb5   :  { %1130 = vmatmul.msk.f32.vlgmr.msra.gmra.mxu2 %vm274_vm8, %v1727_v58 }
  0xb6   :  { %v1289_v63 = vpop.permute.xlu0 %1288 }
  0xb7   :  { %v1294_v1 = vpop.permute.xlu1 %1293  ;;  %v1290_v0 = vunpack.i.l.bf16 %v1289_v63  ;;  %v1291_v19 = vunpack.i.h.bf16 %v1289_v63 }
  0xb8   :  { %v1296_v3 = vunpack.i.h.bf16 %v1294_v1  ;;  %v1295_v5 = vunpack.i.l.bf16 %v1294_v1 }
  0xb9   :  { %v240_v43 = vsel %vm115_vm2, %v1216_v62, %v1290_v0  ;;  %v241_v51 = vsel %vm115_vm2, %v1290_v0, %v1291_v19 }
  0xba   :  { %v41_v13 = vsel %vm40_vm7, %v1295_v5, %v1296_v3  ;;  %v42_v14 = vsel %vm40_vm7, %v1296_v3, %v1275_v53 }
  0xbb   :  { %292 = vmatpush.msra.mxu0 %v41_v13  ;;  %312 = vmatpush.msra.mxu1 %v42_v14 }
  0xbd   :  { %293 = vmatpush.msra.mxu0 %v1565_v2  ;;  %313 = vmatpush.msra.mxu1 %v1571_v4  ;;  %v255_v2 = vsel %vm130_vm1, %v1270_v18, %v1271_v17  ;;  %v1316_v4 = vunpack.i.h.bf16 %v1314_v23 }
  0xbe   :  { %v1304_v22 = vpop.permute.xlu0 %1303  ;;  %1128 = vmatmul.msk.f32.vlgmr.msra.gmra.mxu0 %vm274_vm8, %v1727_v58  ;;  %1129 = vmatmul.msk.f32.vlgmr.msra.gmra.mxu1 %vm274_vm8, %v1727_v58 }
  0xbf   :  { %365 = vmatpush.msrb.mxu0 %v268_v20  ;;  %385 = vmatpush.msrb.mxu1 %v269_v21  ;;  %v1306_v27 = vunpack.i.h.bf16 %v1304_v22  ;;  %v1305_v12 = vunpack.i.l.bf16 %v1304_v22  ;;  %v1309_v28 = vpop.permute.xlu1 %1308  ;;  %v199_v62 = vsel %vm70_vm5, %v1315_v35, %v1316_v4 }
  0xc0   :  { %v1311_v42 = vunpack.i.h.bf16 %v1309_v28  ;;  %v1310_v32 = vunpack.i.l.bf16 %v1309_v28 }
  0xc1   :  { %366 = vmatpush.msrb.mxu0 %v254_v31  ;;  %386 = vmatpush.msrb.mxu1 %v255_v2  ;;  %v226_v52 = vsel %vm100_vm3, %v1231_v16, %v1305_v12  ;;  %v227_v34 = vsel %vm100_vm3, %v1305_v12, %v1306_v27 }
  0xc2   :  { %v1766_v38 = vsel %vm85_vm4, %v1310_v32, %v1311_v42  ;;  %v1771_v61 = vsel %vm85_vm4, %v1246_v26, %v1310_v32 }
  0xc3   :  { %367 = vmatpush.msrb.mxu0 %v240_v43  ;;  %387 = vmatpush.msrb.mxu1 %v241_v51 }
  0xc5   :  { %368 = vmatpush.msrb.mxu0 %v226_v52  ;;  %388 = vmatpush.msrb.mxu1 %v227_v34 }
  0xc6   :  { %v1319_v15 = vpop.permute.xlu0 %1318 }
  0xc7   :  { %369 = vmatpush.msrb.mxu0 %v1771_v61  ;;  %389 = vmatpush.msrb.mxu1 %v1766_v38  ;;  %v1321_v16 = vunpack.i.h.bf16 %v1319_v15  ;;  %v1320_v40 = vunpack.i.l.bf16 %v1319_v15  ;;  %v1324_v41 = vpop.permute.xlu1 %1323 }
  0xc8   :  { %v1326_v45 = vunpack.i.h.bf16 %v1324_v41  ;;  %v1325_v46 = vunpack.i.l.bf16 %v1324_v41 }
  0xc9   :  { %370 = vmatpush.msrb.mxu0 %v198_v44  ;;  %390 = vmatpush.msrb.mxu1 %v199_v62  ;;  %v184_v25 = vsel %vm55_vm6, %v1286_v30, %v1320_v40  ;;  %v185_v26 = vsel %vm55_vm6, %v1320_v40, %v1321_v16  ;;  %v1796_v30 = vperm.slane %v23_v24, 0  ;;  %v1513_v40 = vmov 0  }
  0xca   :  { %v171_v48 = vsel %vm40_vm7, %v1325_v46, %v1326_v45  ;;  %v170_v36 = vsel %vm40_vm7, %v1301_v37, %v1325_v46  ;;  %1327 = vset.pattern.permute.xlu1 %v1513_v40 }
  0xcb   :  { %371 = vmatpush.msrb.mxu0 %v184_v25  ;;  %391 = vmatpush.msrb.mxu1 %v185_v26 }
  0xcd   :  { %372 = vmatpush.msrb.mxu0 %v170_v36  ;;  %392 = vmatpush.msrb.mxu1 %v171_v48 }
  0xcf   :  { %373 = vmatpush.msrb.mxu0 %v1586_v7  ;;  %393 = vmatpush.msrb.mxu1 %v1605_v9 }
  0xd0   :  { %1132 = vmatmul.msk.f32.vlgmr.msrb.gmra.mxu0 %vm274_vm8, %v1727_v58  ;;  %1133 = vmatmul.msk.f32.vlgmr.msrb.gmra.mxu1 %vm274_vm8, %v1727_v58 }
 0x135   :  { %v355_v56 = vpop.f32.mrf.mxu3 }
 0x136   :  { %v1817_v58 = vmul.f32 %v1813_v55, %v355_v56  ;;  %v1515_v56 = vmov 1  }
 0x138   :  { %v335_v50 = vpop.f32.mrf.mxu2 }
 0x139   :  { %v1811_v54 = vmul.f32 %v1806_v49, %v335_v50 }
 0x13b   :  { %v295_v37 = vpop.f32.mrf.mxu0  ;;  %v315_v39 = vpop.f32.mrf.mxu1 }
 0x13c   :  { %v1801_v7 = vmul.f32 %v1796_v30, %v295_v37  ;;  %v1804_v9 = vmul.f32 %v1798_v33, %v315_v39  ;;  %v1847_v37 = vld [vmem:[%s2157_s4] sm:$0xff]  ;;  %s1516_s4 = smov 25  }
 0x13e   :  { %v417_v53 = vadd.f32 %v1804_v9, %v1801_v7 }
 0x140   :  { %v418_v57 = vadd.f32 %v417_v53, %v1811_v54 }
 0x142   :  { %v419_v3 = vadd.f32 %v418_v57, %v1817_v58 }
 0x14d   :  { %v375_v63 = vpop.f32.mrf.mxu0  ;;  %v395_v1 = vpop.f32.mrf.mxu1 }
 0x14e   :  { %v1825_v5 = vmul.f32 %v1819_v59, %v375_v63  ;;  %v1828_v6 = vmul.f32 %v1821_v60, %v395_v1 }
 0x150   :  { %v420_v8 = vadd.f32 %v419_v3, %v1825_v5 }
 0x152   :  { %v421_v13 = vadd.f32 %v420_v8, %v1828_v6 }
 0x154   :  { %422 = vadd.xlane.f32.xlu2 %v421_v13 }
 0x1c7   :  { %v423_v14 = vpop.xlane.xlu2 %422 }
 0x1c8   :  { %v424_v17 = vmul.f32 0.001953125, %v423_v14 }
 0x1ca   :  { %v425_v18 = vsub.f32 %v1801_v7, %v424_v17  ;;  %v426_v0 = vsub.f32 %v1804_v9, %v424_v17  ;;  %v427_v19 = vsub.f32 %v1811_v54, %v424_v17  ;;  %v428_v20 = vsub.f32 %v1817_v58, %v424_v17 }
 0x1cb   :  { %v429_v21 = vsub.f32 %v1825_v5, %v424_v17  ;;  %v430_v12 = vsub.f32 %v1828_v6, %v424_v17 }
 0x1cc   :  { %v431_v22 = vmul.f32 %v425_v18, %v1796_v30  ;;  %v432_v23 = vmul.f32 %v426_v0, %v1798_v33  ;;  %v433_v27 = vmul.f32 %v427_v19, %v1806_v49  ;;  %v434_v28 = vmul.f32 %v428_v20, %v1813_v55 }
 0x1cd   :  { %v435_v4 = vmul.f32 %v429_v21, %v1819_v59  ;;  %v436_v32 = vmul.f32 %v430_v12, %v1821_v60 }
 0x1ce   :  { %v437_v31 = vmul.f32 %v431_v22, %v431_v22  ;;  %v438_v2 = vmul.f32 %v432_v23, %v432_v23  ;;  %v439_v42 = vmul.f32 %v433_v27, %v433_v27  ;;  %v440_v51 = vmul.f32 %v434_v28, %v434_v28 }
 0x1cf   :  { %v441_v34 = vmul.f32 %v435_v4, %v435_v4  ;;  %v442_v62 = vmul.f32 %v436_v32, %v436_v32 }
 0x1d0   :  { %v443_v43 = vadd.f32 %v438_v2, %v437_v31 }
 0x1d2   :  { %v444_v52 = vadd.f32 %v443_v43, %v439_v42 }
 0x1d4   :  { %v445_v35 = vadd.f32 %v444_v52, %v440_v51 }
 0x1d6   :  { %v446_v15 = vadd.f32 %v445_v35, %v441_v34 }
 0x1d8   :  { %v447_v16 = vadd.f32 %v446_v15, %v442_v62 }
 0x1da   :  { %448 = vadd.xlane.f32.xlu0 %v447_v16 }
 0x24d   :  { %v449_v41 = vpop.xlane.xlu0 %448 }
 0x24e   :  { %v450_v44 = vmul.f32 0.001953125, %v449_v41 }
 0x250   :  { %v452_v45 = vadd.f32 1e-05, %v450_v44 }
 0x252   :  { %1501 = vrsqrt.f32 %v452_v45  ;;  %vm459_vm10 = vweird.f32 %v452_v45 }
 0x258   :  { %v1502_v46 = vpop.eup %1501 }
 0x259   :  { %v454_v25 = vmul.f32 %v1502_v46, %v452_v45  ;;  %vm460_vm9 = vweird.f32 %v1502_v46 }
 0x25a   :  { %vm461_vm11 = vmor %vm459_vm10, %vm460_vm9 }
 0x25b   :  { %v455_v26 = vmul.f32 %v1502_v46, %v454_v25 }
 0x25d   :  { %v456_v48 = vmul.f32 0.5, %v455_v26 }
 0x25f   :  { %v457_v36 = vsub.f32 1.5, %v456_v48 }
 0x261   :  { %v458_v24 = vmul.f32 %v1502_v46, %v457_v36 }
 0x263   :  { %v462_v39 = vsel %vm461_vm11, %v1502_v46, %v458_v24 }
 0x264   :  { %v463_v50 = vmul.f32 %v462_v39, %v1847_v37 }
 0x266   :  { %v464_v53 = vmul.f32 %v463_v50, %v424_v17 }
 0x268   :  { %466 = vrot.lane.b32.xlu1 %v464_v53, %s1514_s24 }
 0x270   :  { %472 = vperm.xlu1 %1327, %v463_v50  }
 0x278   :  { %1328 = vset.pattern.permute.xlu1 %v1515_v56 }
 0x2da   :  { %v467_v57 = vpop.permute.xlu1 %466 }
 0x2db   :  { %v469_v63 = vsub.f32 %v1847_v37, %v467_v57 }
 0x2dd   :  { %483 = vperm.xlu1 %1328, %v469_v63  }
 0x2e2   :  { %v473_v1 = vpop.permute.xlu1 %472 }
 0x2e3   :  { %v478_v3 = vmul.f32 %v473_v1, %v1817_v58  ;;  %v475_v8 = vmul.f32 %v473_v1, %v1801_v7  ;;  %v476_v13 = vmul.f32 %v473_v1, %v1804_v9  ;;  %v477_v14 = vmul.f32 %v473_v1, %v1811_v54 }
 0x2e4   :  { %v479_v7 = vmul.f32 %v473_v1, %v1825_v5  ;;  %v480_v9 = vmul.f32 %v473_v1, %v1828_v6 }
 0x34f   :  { %v484_v17 = vpop.permute.xlu1 %483 }
 0x350   :  { %v489_v18 = vadd.f32 %v484_v17, %v478_v3  ;;  %v486_v0 = vadd.f32 %v484_v17, %v475_v8  ;;  %v487_v19 = vadd.f32 %v484_v17, %v476_v13  ;;  %v488_v20 = vadd.f32 %v484_v17, %v477_v14 }
 0x351   :  { %v490_v31 = vadd.f32 %v484_v17, %v479_v7  ;;  %v491_v2 = vadd.f32 %v484_v17, %v480_v9 }
 0x352   :  { %v495_v21 = vmax.f32 %v489_v18, 0.0  ;;  %v492_v22 = vmax.f32 %v486_v0, 0.0  ;;  %v493_v12 = vmax.f32 %v487_v19, 0.0  ;;  %v494_v28 = vmax.f32 %v488_v20, 0.0 }
 0x353   :  { %v496_v42 = vmax.f32 %v490_v31, 0.0  ;;  %v497_v43 = vmax.f32 %v491_v2, 0.0 }
 0x354   :  { %v501_v23 = vmul.f32 %v495_v21, %v1813_v55  ;;  %v498_v27 = vmul.f32 %v492_v22, %v1796_v30  ;;  %v499_v54 = vmul.f32 %v493_v12, %v1798_v33  ;;  %v500_v58 = vmul.f32 %v494_v28, %v1806_v49 }
 0x355   :  { %v502_v32 = vmul.f32 %v496_v42, %v1819_v59  ;;  %v503_v51 = vmul.f32 %v497_v43, %v1821_v60 }
 0x356   :  { %639 = vrot.lane.b32.xlu2 %v501_v23, %s1516_s4  ;;  %507 = vrot.lane.b32.xlu1 %v498_v27, %s1516_s4  ;;  %v1329_v4 = vpack.i.bf16 %v500_v58, %v499_v54 }
 0x357   :  { %v1334_v52 = vpack.i.bf16 %v503_v51, %v502_v32 }
 0x35e   :  { %1330 = vrot.lane.b32.xlu1 %v1329_v4, %s1516_s4 }
 0x366   :  { %1335 = vrot.lane.b32.xlu1 %v1334_v52, %s1516_s4 }
 0x3b0   :  { %v1876_v44 = vpop.permute.xlu2 %639 }
 0x3b1   :  { %v651_v50 = vsel %vm513_vm12, 0.0, %v1876_v44 }
 0x3c8   :  { %v1864_v34 = vpop.permute.xlu1 %507 }
 0x3c9   :  { %v520_v35 = vsel %vm513_vm12, 0.0, %v1864_v34 }
 0x3d0   :  { %v1331_v5 = vpop.permute.xlu1 %1330 }
 0x3d1   :  { %v1332_v6 = vunpack.i.l.bf16 %v1331_v5  ;;  %v1333_v16 = vunpack.i.h.bf16 %v1331_v5 }
 0x3d3   :  { %v1870_v62 = vsel %vm513_vm12, %v1864_v34, %v1332_v6  ;;  %v1879_v45 = vsel %vm513_vm12, %v1332_v6, %v1333_v16  ;;  %v521_v36 = vsel %vm513_vm12, %v1333_v16, 0.0 }
 0x3d4   :  { %v1354_v15 = vpack.i.bf16 %v1870_v62, %v520_v35 }
 0x3d6   :  { %1355 = vrot.lane.b32.xlu2 %v1354_v15, %s1505_s29  ;;  %1345 = vrot.lane.b32.xlu1 %v1354_v15, %s1507_s11 }
 0x3d7   :  { %1340 = vrot.lane.b32.xlu0 %v1354_v15, %s1506_s30 }
 0x3d8   :  { %v1336_v40 = vpop.permute.xlu1 %1335 }
 0x3d9   :  { %v1337_v41 = vunpack.i.l.bf16 %v1336_v40  ;;  %v1338_v26 = vunpack.i.h.bf16 %v1336_v40 }
 0x3db   :  { %v1883_v46 = vsel %vm513_vm12, %v1876_v44, %v1337_v41  ;;  %v1891_v48 = vsel %vm513_vm12, %v1337_v41, %v1338_v26  ;;  %v652_v39 = vsel %vm513_vm12, %v1338_v26, 0.0 }
 0x3dc   :  { %v1369_v25 = vpack.i.bf16 %v1883_v46, %v1879_v45  ;;  %v1384_v24 = vpack.i.bf16 %v521_v36, %v1891_v48  ;;  %v1404_v53 = vpack.i.bf16 %v651_v50, %v652_v39 }
 0x3de   :  { %1370 = vrot.lane.b32.xlu2 %v1369_v25, %s1505_s29  ;;  %1350 = vrot.lane.b32.xlu1 %v1369_v25, %s1506_s30 }
 0x3df   :  { %1360 = vrot.lane.b32.xlu0 %v1369_v25, %s1507_s11 }
 0x3e6   :  { %1385 = vrot.lane.b32.xlu2 %v1384_v24, %s1506_s30  ;;  %1365 = vrot.lane.b32.xlu1 %v1354_v15, %s1508_s12 }
 0x3e7   :  { %1375 = vrot.lane.b32.xlu0 %v1354_v15, %s1509_s13 }
 0x3ee   :  { %1400 = vrot.lane.b32.xlu2 %v1384_v24, %s1507_s11  ;;  %1380 = vrot.lane.b32.xlu1 %v1369_v25, %s1508_s12 }
 0x3ef   :  { %1390 = vrot.lane.b32.xlu0 %v1354_v15, %s1510_s14 }
 0x3f6   :  { %1415 = vrot.lane.b32.xlu2 %v1369_v25, %s1510_s14  ;;  %1395 = vrot.lane.b32.xlu1 %v1369_v25, %s1509_s13 }
 0x3f7   :  { %1405 = vrot.lane.b32.xlu0 %v1404_v53, %s1506_s30 }
 0x3fe   :  { %1430 = vrot.lane.b32.xlu2 %v1354_v15, %s1512_s20  ;;  %1410 = vrot.lane.b32.xlu1 %v1354_v15, %s1511_s19 }
 0x3ff   :  { %1420 = vrot.lane.b32.xlu0 %v1384_v24, %s1505_s29 }
 0x406   :  { %1445 = vrot.lane.b32.xlu2 %v1404_v53, %s1505_s29  ;;  %1425 = vrot.lane.b32.xlu1 %v1404_v53, %s1507_s11 }
 0x407   :  { %1435 = vrot.lane.b32.xlu0 %v1369_v25, %s1511_s19 }
 0x40e   :  { %1460 = vrot.lane.b32.xlu2 %v1404_v53, %s1508_s12  ;;  %1440 = vrot.lane.b32.xlu1 %v1384_v24, %s1508_s12 }
 0x40f   :  { %1450 = vrot.lane.b32.xlu0 %v1369_v25, %s1512_s20 }
 0x416   :  { %1475 = vrot.lane.b32.xlu2 %v1384_v24, %s1511_s19  ;;  %1455 = vrot.lane.b32.xlu1 %v1384_v24, %s1509_s13 }
 0x417   :  { %1465 = vrot.lane.b32.xlu0 %v1384_v24, %s1510_s14 }
 0x41e   :  { %1490 = vrot.lane.b32.xlu2 %v1404_v53, %s1511_s19  ;;  %1470 = vrot.lane.b32.xlu1 %v1404_v53, %s1509_s13 }
 0x41f   :  { %1480 = vrot.lane.b32.xlu0 %v1404_v53, %s1510_s14 }
 0x426   :  { %1485 = vrot.lane.b32.xlu1 %v1384_v24, %s1512_s20 }
 0x427   :  { %1495 = vrot.lane.b32.xlu0 %v1404_v53, %s1512_s20 }
 0x430   :  { %v1356_v56 = vpop.permute.xlu2 %1355 }
 0x431   :  { %v1358_v18 = vunpack.i.h.bf16 %v1356_v56  ;;  %v1357_v0 = vunpack.i.l.bf16 %v1356_v56 }
 0x433   :  { %v602_v23 = vsel %vm115_vm2, %v1357_v0, %v1358_v18 }
 0x438   :  { %v1924_v57 = vpop.permute.xlu2 %1370 }
 0x439   :  { %v1372_v9 = vunpack.i.l.bf16 %v1924_v57 }
 0x43b   :  { %v603_v42 = vsel %vm115_vm2, %v1358_v18, %v1372_v9 }
 0x440   :  { %v1926_v63 = vpop.permute.xlu2 %1385 }
 0x441   :  { %v1388_v27 = vunpack.i.h.bf16 %v1926_v63 }
 0x448   :  { %v1346_v1 = vpop.permute.xlu1 %1345  ;;  %v1930_v21 = vpop.permute.xlu2 %1400 }
 0x449   :  { %v1341_v3 = vpop.permute.xlu0 %1340  ;;  %v1348_v8 = vunpack.i.h.bf16 %v1346_v1  ;;  %v1347_v13 = vunpack.i.l.bf16 %v1346_v1  ;;  %v1403_v54 = vunpack.i.h.bf16 %v1930_v21 }
 0x44a   :  { %v1343_v14 = vunpack.i.h.bf16 %v1341_v3  ;;  %v1342_v17 = vunpack.i.l.bf16 %v1341_v3 }
 0x44b   :  { %v616_v20 = vsel %vm130_vm1, %v1347_v13, %v1348_v8 }
 0x44c   :  { %v630_v19 = vsel %vm145_vm0, %v1342_v17, %v1343_v14 }
 0x44d   :  { %778 = vmatpush.msrb.mxu2 %v630_v19 }
 0x44f   :  { %779 = vmatpush.msrb.mxu2 %v616_v20 }
 0x450   :  { %v1932_v22 = vpop.permute.xlu1 %1350  ;;  %v1947_v5 = vpop.permute.xlu2 %1415 }
 0x451   :  { %v1352_v12 = vunpack.i.l.bf16 %v1932_v22  ;;  %v1937_v28 = vpop.permute.xlu0 %1360  ;;  %780 = vmatpush.msrb.mxu2 %v602_v23  ;;  %v1353_v3 = vunpack.i.h.bf16 %v1932_v22  ;;  %v1417_v13 = vunpack.i.l.bf16 %v1947_v5 }
 0x452   :  { %v1362_v7 = vunpack.i.l.bf16 %v1937_v28 }
 0x453   :  { %v631_v58 = vsel %vm145_vm0, %v1343_v14, %v1352_v12  ;;  %v632_v31 = vsel %vm145_vm0, %v1352_v12, %v1388_v27 }
 0x454   :  { %798 = vmatpush.msrb.mxu3 %v631_v58  ;;  %818 = vmatpush.msra.mxu0 %v632_v31  ;;  %v617_v2 = vsel %vm130_vm1, %v1348_v8, %v1362_v7  ;;  %v618_v4 = vsel %vm130_vm1, %v1362_v7, %v1403_v54 }
 0x456   :  { %799 = vmatpush.msrb.mxu3 %v617_v2  ;;  %819 = vmatpush.msra.mxu0 %v618_v4  ;;  %v1387_v4 = vunpack.i.l.bf16 %v1926_v63 }
 0x458   :  { %v1366_v43 = vpop.permute.xlu1 %1365  ;;  %800 = vmatpush.msrb.mxu3 %v603_v42  ;;  %v1957_v39 = vpop.permute.xlu2 %1430  ;;  %v1363_v42 = vunpack.i.h.bf16 %v1937_v28  ;;  %v762_v63 = vsel %vm145_vm0, %v1353_v3, %v1387_v4 }
 0x459   :  { %v1368_v32 = vunpack.i.h.bf16 %v1366_v43  ;;  %v1367_v51 = vunpack.i.l.bf16 %v1366_v43  ;;  %v1376_v52 = vpop.permute.xlu0 %1375  ;;  %v1433_v20 = vunpack.i.h.bf16 %v1957_v39  ;;  %v1432_v22 = vunpack.i.l.bf16 %v1957_v39  ;;  %v1995_v43 = vld [vmem:[%s2158_s2] sm:$0xff] }
 0x45a   :  { %v1378_v6 = vunpack.i.h.bf16 %v1376_v52  ;;  %v1377_v35 = vunpack.i.l.bf16 %v1376_v52 }
 0x45b   :  { %v588_v15 = vsel %vm100_vm3, %v1367_v51, %v1368_v32  ;;  %v532_v31 = vsel %vm40_vm7, %v1432_v22, %v1433_v20 }
 0x45c   :  { %781 = vmatpush.msrb.mxu2 %v588_v15  ;;  %v574_v16 = vsel %vm85_vm4, %v1377_v35, %v1378_v6  ;;  %v1373_v15 = vunpack.i.h.bf16 %v1924_v57 }
 0x45e   :  { %782 = vmatpush.msrb.mxu2 %v574_v16 }
 0x460   :  { %v1951_v40 = vpop.permute.xlu1 %1380  ;;  %v1975_v0 = vpop.permute.xlu2 %1445 }
 0x461   :  { %v1382_v41 = vunpack.i.l.bf16 %v1951_v40  ;;  %v1391_v25 = vpop.permute.xlu0 %1390  ;;  %v1448_v28 = vunpack.i.h.bf16 %v1975_v0 }
 0x462   :  { %v1393_v26 = vunpack.i.h.bf16 %v1391_v25  ;;  %v1392_v36 = vunpack.i.l.bf16 %v1391_v25 }
 0x463   :  { %v589_v24 = vsel %vm100_vm3, %v1368_v32, %v1382_v41  ;;  %v733_v57 = vsel %vm115_vm2, %v1448_v28, %v1373_v15  ;;  %v1418_v28 = vunpack.i.h.bf16 %v1947_v5 }
 0x464   :  { %v560_v50 = vsel %vm70_vm5, %v1392_v36, %v1393_v26  ;;  %801 = vmatpush.msrb.mxu3 %v589_v24  ;;  %v561_v18 = vsel %vm70_vm5, %v1393_v26, %v1417_v13  ;;  %v1383_v24 = vunpack.i.h.bf16 %v1951_v40 }
 0x465   :  { %783 = vmatpush.msrb.mxu2 %v560_v50 }
 0x468   :  { %v1960_v53 = vpop.permute.xlu1 %1395  ;;  %v1998_v32 = vpop.permute.xlu2 %1460 }
 0x469   :  { %v1397_v56 = vunpack.i.l.bf16 %v1960_v53  ;;  %v1963_v1 = vpop.permute.xlu0 %1405  ;;  %v1463_v25 = vunpack.i.h.bf16 %v1998_v32 }
 0x46a   :  { %v1408_v8 = vunpack.i.h.bf16 %v1963_v1 }
 0x46b   :  { %v575_v14 = vsel %vm85_vm4, %v1378_v6, %v1397_v56  ;;  %v719_v39 = vsel %vm100_vm3, %v1463_v25, %v1383_v24 }
 0x46c   :  { %802 = vmatpush.msrb.mxu3 %v575_v14  ;;  %v761_v17 = vsel %vm145_vm0, %v1408_v8, %v1353_v3 }
 0x46d   :  { %838 = vmatpush.msra.mxu1 %v761_v17 }
 0x46e   :  { %803 = vmatpush.msrb.mxu3 %v561_v18  ;;  %v1407_v18 = vunpack.i.l.bf16 %v1963_v1  ;;  %v1447_v1 = vunpack.i.l.bf16 %v1975_v0 }
 0x470   :  { %v1411_v19 = vpop.permute.xlu1 %1410 }
 0x471   :  { %v1413_v23 = vunpack.i.h.bf16 %v1411_v19  ;;  %v1412_v27 = vunpack.i.l.bf16 %v1411_v19  ;;  %v1979_v12 = vpop.permute.xlu0 %1420 }
 0x472   :  { %v1423_v7 = vunpack.i.h.bf16 %v1979_v12  ;;  %v1422_v51 = vunpack.i.l.bf16 %v1979_v12  ;;  %v1476_v12 = vpop.permute.xlu2 %1475 }
 0x473   :  { %v546_v54 = vsel %vm55_vm6, %v1412_v27, %v1413_v23 }
 0x474   :  { %784 = vmatpush.msrb.mxu2 %v546_v54  ;;  %v604_v58 = vsel %vm115_vm2, %v1372_v9, %v1423_v7  ;;  %v1402_v9 = vunpack.i.l.bf16 %v1930_v21  ;;  %v734_v36 = vsel %vm115_vm2, %v1373_v15, %v1422_v51  ;;  %v763_v7 = vsel %vm145_vm0, %v1387_v4, %v1407_v18 }
 0x475   :  { %820 = vmatpush.msra.mxu0 %v604_v58  ;;  %v735_v4 = vsel %vm115_vm2, %v1422_v51, %v1447_v1  ;;  %v1477_v51 = vunpack.i.l.bf16 %v1476_v12 }
 0x476   :  { %785 = vmatpush.msrb.mxu2 %v532_v31  ;;  %v748_v16 = vsel %vm130_vm1, %v1363_v42, %v1402_v9 }
 0x478   :  { %v1426_v52 = vpop.permute.xlu1 %1425  ;;  %1135 = vmatpush.msk.msrb.mxu2 %vm1986_vm13, %v1864_v34 }
 0x479   :  { %v1428_v6 = vunpack.i.h.bf16 %v1426_v52  ;;  %v2006_v35 = vpop.permute.xlu0 %1435  ;;  %1136 = vmatmul.msk.f32.vlgmr.msrb.gmra.mxu2 %vm274_vm8, %v1995_v43  ;;  %v1427_v27 = vunpack.i.l.bf16 %v1426_v52 }
 0x47a   :  { %858 = vmatpush.msra.mxu2 %v762_v63  ;;  %v1437_v21 = vunpack.i.l.bf16 %v2006_v35 }
 0x47b   :  { %v747_v34 = vsel %vm130_vm1, %v1428_v6, %v1363_v42  ;;  %v1478_v6 = vunpack.i.h.bf16 %v1476_v12 }
 0x47c   :  { %859 = vmatpush.msra.mxu2 %v748_v16  ;;  %v547_v26 = vsel %vm55_vm6, %v1413_v23, %v1437_v21  ;;  %839 = vmatpush.msra.mxu1 %v747_v34  ;;  %v1491_v16 = vpop.permute.xlu2 %1490 }
 0x47d   :  { %804 = vmatpush.msrb.mxu3 %v547_v26 }
 0x47e   :  { %860 = vmatpush.msra.mxu2 %v734_v36  ;;  %840 = vmatpush.msra.mxu1 %v733_v57  ;;  %v1492_v57 = vunpack.i.l.bf16 %v1491_v16 }
 0x480   :  { %v1441_v50 = vpop.permute.xlu1 %1440  ;;  %841 = vmatpush.msra.mxu1 %v719_v39  ;;  %v679_v18 = vsel %vm55_vm6, %v1477_v51, %v1492_v57 }
 0x481   :  { %v1443_v3 = vunpack.i.h.bf16 %v1441_v50  ;;  %v1442_v8 = vunpack.i.l.bf16 %v1441_v50  ;;  %v2020_v14 = vpop.permute.xlu0 %1450 }
 0x482   :  { %v1452_v17 = vunpack.i.l.bf16 %v2020_v14 }
 0x483   :  { %v590_v19 = vsel %vm100_vm3, %v1382_v41, %v1443_v3  ;;  %v720_v22 = vsel %vm100_vm3, %v1383_v24, %v1442_v8  ;;  %v1398_v41 = vunpack.i.h.bf16 %v1960_v53 }
 0x484   :  { %v533_v23 = vsel %vm40_vm7, %v1433_v20, %v1452_v17  ;;  %821 = vmatpush.msra.mxu0 %v590_v19  ;;  %861 = vmatpush.msra.mxu2 %v720_v22  ;;  %v749_v20 = vsel %vm130_vm1, %v1402_v9, %v1427_v27  ;;  %v1438_v9 = vunpack.i.h.bf16 %v2006_v35  ;;  %v1453_v22 = vunpack.i.h.bf16 %v2020_v14 }
 0x485   :  { %805 = vmatpush.msrb.mxu3 %v533_v23 }
 0x486   :  { %v678_v25 = vsel %vm55_vm6, %v1438_v9, %v1477_v51 }
 0x487   :  { %806 = vmatpush.msrb.mxu3 %v1870_v62  ;;  %v1462_v62 = vunpack.i.l.bf16 %v1998_v32 }
 0x488   :  { %v1456_v40 = vpop.permute.xlu1 %1455  ;;  %1137 = vmatmul.msk.f32.vlgmr.msrb.gmra.mxu3 %vm274_vm8, %v1995_v43 }
 0x489   :  { %878 = vmatpush.msra.mxu3 %v763_v7  ;;  %v1458_v54 = vunpack.i.h.bf16 %v1456_v40  ;;  %v1457_v58 = vunpack.i.l.bf16 %v1456_v40  ;;  %v1466_v31 = vpop.permute.xlu0 %1465  ;;  %v721_v15 = vsel %vm100_vm3, %v1442_v8, %v1462_v62 }
 0x48a   :  { %v1468_v42 = vunpack.i.h.bf16 %v1466_v31  ;;  %v1467_v52 = vunpack.i.l.bf16 %v1466_v31 }
 0x48b   :  { %879 = vmatpush.msra.mxu3 %v749_v20  ;;  %v576_v0 = vsel %vm85_vm4, %v1397_v56, %v1458_v54  ;;  %v706_v63 = vsel %vm85_vm4, %v1398_v41, %v1457_v58  ;;  %v548_v56 = vsel %vm55_vm6, %v1437_v21, %v1478_v6 }
 0x48c   :  { %822 = vmatpush.msra.mxu0 %v576_v0  ;;  %862 = vmatpush.msra.mxu2 %v706_v63  ;;  %v562_v32 = vsel %vm70_vm5, %v1417_v13, %v1468_v42  ;;  %v692_v53 = vsel %vm70_vm5, %v1418_v28, %v1467_v52  ;;  %v1493_v13 = vunpack.i.h.bf16 %v1491_v16 }
 0x48d   :  { %880 = vmatpush.msra.mxu3 %v735_v4 }
 0x48e   :  { %823 = vmatpush.msra.mxu0 %v562_v32  ;;  %863 = vmatpush.msra.mxu2 %v692_v53  ;;  %v677_v8 = vsel %vm55_vm6, %v1493_v13, %v1438_v9 }
 0x48f   :  { %881 = vmatpush.msra.mxu3 %v721_v15 }
 0x490   :  { %v1471_v35 = vpop.permute.xlu1 %1470  ;;  %824 = vmatpush.msra.mxu0 %v548_v56  ;;  %864 = vmatpush.msra.mxu2 %v678_v25 }
 0x491   :  { %v1473_v34 = vunpack.i.h.bf16 %v1471_v35  ;;  %v1472_v26 = vunpack.i.l.bf16 %v1471_v35  ;;  %v1481_v36 = vpop.permute.xlu0 %1480 }
 0x492   :  { %v1483_v5 = vunpack.i.h.bf16 %v1481_v36  ;;  %v1482_v24 = vunpack.i.l.bf16 %v1481_v36 }
 0x493   :  { %v705_v39 = vsel %vm85_vm4, %v1473_v34, %v1398_v41  ;;  %v707_v50 = vsel %vm85_vm4, %v1457_v58, %v1472_v26 }
 0x494   :  { %842 = vmatpush.msra.mxu1 %v705_v39  ;;  %882 = vmatpush.msra.mxu3 %v707_v50  ;;  %v691_v21 = vsel %vm70_vm5, %v1483_v5, %v1418_v28  ;;  %v693_v3 = vsel %vm70_vm5, %v1467_v52, %v1482_v24 }
 0x496   :  { %843 = vmatpush.msra.mxu1 %v691_v21  ;;  %883 = vmatpush.msra.mxu3 %v693_v3 }
 0x498   :  { %v1486_v19 = vpop.permute.xlu1 %1485  ;;  %844 = vmatpush.msra.mxu1 %v677_v8  ;;  %884 = vmatpush.msra.mxu3 %v679_v18 }
 0x499   :  { %v1488_v23 = vunpack.i.h.bf16 %v1486_v19  ;;  %v1487_v27 = vunpack.i.l.bf16 %v1486_v19  ;;  %v1496_v12 = vpop.permute.xlu0 %1495 }
 0x49a   :  { %v1498_v7 = vunpack.i.h.bf16 %v1496_v12  ;;  %v1497_v1 = vunpack.i.l.bf16 %v1496_v12  ;;  %v1518_v12 = vmov 3  }
 0x49b   :  { %v534_v40 = vsel %vm40_vm7, %v1452_v17, %v1488_v23  ;;  %v664_v41 = vsel %vm40_vm7, %v1453_v22, %v1487_v27 }
 0x49c   :  { %825 = vmatpush.msra.mxu0 %v534_v40  ;;  %v663_v54 = vsel %vm40_vm7, %v1498_v7, %v1453_v22  ;;  %865 = vmatpush.msra.mxu2 %v664_v41  ;;  %v665_v58 = vsel %vm40_vm7, %v1487_v27, %v1497_v1 }
 0x49d   :  { %845 = vmatpush.msra.mxu1 %v663_v54  ;;  %885 = vmatpush.msra.mxu3 %v665_v58 }
 0x49e   :  { %826 = vmatpush.msra.mxu0 %v1879_v45  ;;  %866 = vmatpush.msra.mxu2 %v1883_v46 }
 0x49f   :  { %1140 = vmatpush.msk.msra.mxu1 %vm1986_vm13, %v1876_v44  ;;  %886 = vmatpush.msra.mxu3 %v1891_v48 }
 0x4a0   :  { %1138 = vmatmul.msk.f32.vlgmr.msra.gmra.mxu0 %vm274_vm8, %v1995_v43  ;;  %1142 = vmatmul.msk.f32.vlgmr.msra.gmra.mxu2 %vm274_vm8, %v1995_v43 }
 0x4a1   :  { %974 = vmatpush.msrb.mxu0 %v1641_v47  ;;  %994 = vmatpush.msrb.mxu1 %v1668_v10 }
 0x4a2   :  { %1014 = vmatpush.msrb.mxu2 %v1671_v11  ;;  %1034 = vmatpush.msrb.mxu3 %v1699_v29 }
 0x4a3   :  { %1141 = vmatmul.msk.f32.vlgmr.msra.gmra.mxu1 %vm274_vm8, %v1995_v43  ;;  %1054 = vmatpush.msra.mxu0 %v1771_v61 }
 0x4a4   :  { %1074 = vmatpush.msra.mxu1 %v1766_v38  ;;  %1143 = vmatmul.msk.f32.vlgmr.msra.gmra.mxu3 %vm274_vm8, %v1995_v43 }
 0x4fc   :  { %v788_v44 = vpop.f32.mrf.mxu2 }
 0x4fd   :  { %v2087_v47 = vmul.f32 %v788_v44, %v1796_v30 }
 0x50b   :  { %v808_v45 = vpop.f32.mrf.mxu3 }
 0x50c   :  { %v2090_v10 = vmul.f32 %v808_v45, %v1798_v33 }
 0x50e   :  { %v897_v11 = vadd.f32 %v2090_v10, %v2087_v47 }
 0x51d   :  { %v828_v29 = vpop.f32.mrf.mxu0 }
 0x51e   :  { %v2095_v46 = vmul.f32 %v828_v29, %v1806_v49 }
 0x520   :  { %v898_v38 = vadd.f32 %v897_v11, %v2095_v46  ;;  %v848_v61 = vpop.f32.mrf.mxu1 }
 0x521   :  { %v2099_v48 = vmul.f32 %v848_v61, %v1813_v55 }
 0x523   :  { %v868_v2 = vpop.f32.mrf.mxu2  ;;  %v899_v43 = vadd.f32 %v898_v38, %v2099_v48 }
 0x524   :  { %v2103_v14 = vmul.f32 %v868_v2, %v1819_v59 }
 0x526   :  { %v900_v17 = vadd.f32 %v899_v43, %v2103_v14 }
 0x527   :  { %v888_v31 = vpop.f32.mrf.mxu3 }
 0x528   :  { %v2107_v20 = vmul.f32 %v888_v31, %v1821_v60 }
 0x52a   :  { %v901_v42 = vadd.f32 %v900_v17, %v2107_v20 }
 0x52c   :  { %902 = vadd.xlane.f32.xlu1 %v901_v42 }
 0x59f   :  { %v903_v52 = vpop.xlane.xlu1 %902 }
 0x5a0   :  { %v904_v62 = vmul.f32 0.001953125, %v903_v52 }
 0x5a2   :  { %v905_v4 = vsub.f32 %v2087_v47, %v904_v62  ;;  %v906_v0 = vsub.f32 %v2090_v10, %v904_v62  ;;  %v907_v63 = vsub.f32 %v2095_v46, %v904_v62  ;;  %v908_v28 = vsub.f32 %v2099_v48, %v904_v62 }
 0x5a3   :  { %v909_v9 = vsub.f32 %v2103_v14, %v904_v62  ;;  %v910_v51 = vsub.f32 %v2107_v20, %v904_v62 }
 0x5a4   :  { %v911_v6 = vmul.f32 %v905_v4, %v1796_v30  ;;  %v912_v15 = vmul.f32 %v906_v0, %v1798_v33  ;;  %v913_v32 = vmul.f32 %v907_v63, %v1806_v49  ;;  %v914_v53 = vmul.f32 %v908_v28, %v1813_v55 }
 0x5a5   :  { %v915_v35 = vmul.f32 %v909_v9, %v1819_v59  ;;  %v916_v26 = vmul.f32 %v910_v51, %v1821_v60  ;;  %v1517_v55 = vmov 2   ;;  %v954_v59 = vld [vmem:[%s2159_s3] sm:$0xff] }
 0x5a6   :  { %v917_v56 = vmul.f32 %v911_v6, %v911_v6  ;;  %v918_v16 = vmul.f32 %v912_v15, %v912_v15  ;;  %v919_v25 = vmul.f32 %v913_v32, %v913_v32  ;;  %v920_v36 = vmul.f32 %v914_v53, %v914_v53  ;;  %1499 = vset.pattern.permute.xlu0 %v1517_v55 }
 0x5a7   :  { %v921_v24 = vmul.f32 %v915_v35, %v915_v35  ;;  %v922_v13 = vmul.f32 %v916_v26, %v916_v26  ;;  %1144 = vmatmul.msk.f32.vlgmr.msrb.gmra.mxu0 %vm955_vm14, %v954_v59  ;;  %1145 = vmatmul.msk.f32.vlgmr.msrb.gmra.mxu1 %vm955_vm14, %v954_v59 }
 0x5a8   :  { %v923_v34 = vadd.f32 %v918_v16, %v917_v56  ;;  %1146 = vmatmul.msk.f32.vlgmr.msrb.gmra.mxu2 %vm955_vm14, %v954_v59  ;;  %1147 = vmatmul.msk.f32.vlgmr.msrb.gmra.mxu3 %vm955_vm14, %v954_v59 }
 0x5aa   :  { %v924_v5 = vadd.f32 %v923_v34, %v919_v25 }
 0x5ac   :  { %v925_v30 = vadd.f32 %v924_v5, %v920_v36 }
 0x5ae   :  { %v926_v33 = vadd.f32 %v925_v30, %v921_v24 }
 0x5af   :  { %1148 = vmatmul.msk.f32.vlgmr.msra.gmra.mxu0 %vm955_vm14, %v954_v59  ;;  %1149 = vmatmul.msk.f32.vlgmr.msra.gmra.mxu1 %vm955_vm14, %v954_v59 }
 0x5b0   :  { %v927_v57 = vadd.f32 %v926_v33, %v922_v13 }
 0x5b2   :  { %928 = vadd.xlane.f32.xlu2 %v927_v57 }
 0x624   :  { %v976_v54 = vpop.f32.mrf.mxu0  ;;  %v996_v58 = vpop.f32.mrf.mxu1 }
 0x625   :  { %v929_v49 = vpop.xlane.xlu2 %928 }
 0x626   :  { %v930_v39 = vmul.f32 0.001953125, %v929_v49 }
 0x628   :  { %v931_v50 = vadd.f32 1e-05, %v930_v39 }
 0x62a   :  { %1503 = vrsqrt.f32 %v931_v50  ;;  %vm938_vm0 = vweird.f32 %v931_v50 }
 0x62b   :  { %v1016_v29 = vpop.f32.mrf.mxu2  ;;  %v1036_v43 = vpop.f32.mrf.mxu3 }
 0x62c   :  { %v1056_v4 = vpop.f32.mrf.mxu0  ;;  %v1076_v0 = vpop.f32.mrf.mxu1 }
 0x630   :  { %v1504_v21 = vpop.eup %1503 }
 0x631   :  { %v933_v60 = vmul.f32 %v1504_v21, %v931_v50  ;;  %vm939_vm15 = vweird.f32 %v1504_v21 }
 0x632   :  { %vm940_vm1 = vmor %vm938_vm0, %vm939_vm15 }
 0x633   :  { %v934_v3 = vmul.f32 %v1504_v21, %v933_v60 }
 0x635   :  { %v935_v8 = vmul.f32 0.5, %v934_v3 }
 0x637   :  { %v936_v18 = vsub.f32 1.5, %v935_v8 }
 0x639   :  { %v937_v19 = vmul.f32 %v1504_v21, %v936_v18 }
 0x63b   :  { %v941_v22 = vsel %vm940_vm1, %v1504_v21, %v937_v19 }
 0x63c   :  { %v942_v23 = vmul.f32 %v941_v22, %v1847_v37 }
 0x63e   :  { %v943_v27 = vmul.f32 %v942_v23, %v904_v62 }
 0x640   :  { %945 = vrot.lane.b32.xlu0 %v943_v27, %s1514_s24 }
 0x648   :  { %950 = vrot.lane.b32.xlu0 %v1847_v37, %s1512_s20 }
 0x650   :  { %1081 = vperm.xlu0 %1499, %v942_v23  }
 0x658   :  { %1500 = vset.pattern.permute.xlu0 %v1518_v12 }
 0x6b2   :  { %v946_v7 = vpop.permute.xlu0 %945 }
 0x6b3   :  { %v948_v1 = vsub.f32 %v1847_v37, %v946_v7 }
 0x6ba   :  { %v951_v40 = vpop.permute.xlu0 %950 }
 0x6bb   :  { %v953_v41 = vadd.f32 %v951_v40, %v948_v1 }
 0x6bd   :  { %1092 = vperm.xlu0 %1500, %v953_v41  }
 0x6c2   :  { %v1082_v44 = vpop.permute.xlu0 %1081 }
 0x6c3   :  { %v1084_v45 = vmul.f32 %v1082_v44, %v2087_v47  ;;  %v1085_v11 = vmul.f32 %v1082_v44, %v2090_v10  ;;  %v1086_v38 = vmul.f32 %v1082_v44, %v2095_v46  ;;  %v1087_v61 = vmul.f32 %v1082_v44, %v2099_v48 }
 0x6c4   :  { %v1088_v17 = vmul.f32 %v1082_v44, %v2103_v14  ;;  %v1089_v37 = vmul.f32 %v1082_v44, %v2107_v20 }
 0x72f   :  { %v1093_v2 = vpop.permute.xlu0 %1092 }
 0x730   :  { %v1095_v31 = vadd.f32 %v1093_v2, %v1084_v45  ;;  %v1096_v42 = vadd.f32 %v1093_v2, %v1085_v11  ;;  %v1097_v52 = vadd.f32 %v1093_v2, %v1086_v38  ;;  %v1098_v62 = vadd.f32 %v1093_v2, %v1087_v61 }
 0x731   :  { %v1099_v47 = vadd.f32 %v1093_v2, %v1088_v17  ;;  %v1100_v63 = vadd.f32 %v1093_v2, %v1089_v37 }
 0x732   :  { %v1101_v10 = vadd.f32 %v1095_v31, %v976_v54  ;;  %v1102_v28 = vadd.f32 %v1096_v42, %v996_v58  ;;  %v1103_v9 = vadd.f32 %v1097_v52, %v1016_v29  ;;  %v1104_v46 = vadd.f32 %v1098_v62, %v1036_v43 }
 0x733   :  { %v1105_v6 = vadd.f32 %v1099_v47, %v1056_v4  ;;  %v1106_v48 = vadd.f32 %v1100_v63, %v1076_v0 }
 0x734   :  { %v1107_v15 = vmax.f32 %v1101_v10, 0.0  ;;  %v1108_v32 = vmax.f32 %v1102_v28, 0.0  ;;  %v1109_v51 = vmax.f32 %v1103_v9, 0.0  ;;  %v1110_v14 = vmax.f32 %v1104_v46, 0.0 }
 0x735   :  { %v1111_v20 = vmax.f32 %v1105_v6, 0.0  ;;  %v1112_v53 = vmax.f32 %v1106_v48, 0.0 }
 0x736   :  { %1113 = vst [vmem:[%s2160_s6] sm:$0xff] %v1107_v15 }
 0x737   :  { %1114 = vst [vmem:[%s2160_s6 + $0x8] sm:$0xff] %v1108_v32 }
 0x738   :  { %1115 = vst [vmem:[%s2160_s6 + $0x10] sm:$0xff] %v1109_v51 }
 0x739   :  { %1150 = vst [vmem:[%s2160_s6 + $0x18] sm:$0xff] %v1110_v14 }
 0x73a   :  { %1151 = vst [vmem:[%s2160_s6 + $0x20] sm:$0xff] %v1111_v20 }
 0x73b   :  { %1152 = vst [vmem:[%s2160_s6 + $0x28] sm:$0xff] %v1112_v53 }

</bundles_post_ra>
